<compile_context>
chip_gen: v5e
topology: v5e:2x2
jax: 0.10.0
libtpu: 0.0.40
codegen_flags: <defaults>
</compile_context>

<pallas_src>
import numpy as np
import jax
import jax.numpy as jnp
from jax.experimental import pallas as pl
from jax.experimental.pallas import tpu as pltpu

NEG_SLOPE = 0.1                      # DFNet uses nn.LeakyReLU(negative_slope=0.1)
PY = 8                               # vertical pad rows (interior store stays aligned)
SHIFTS = (-4, -2, -1, 0, 1, 2, 4)    # row shifts needed by the dil-1/2/4 branches


def _lrelu(x):
    return jnp.where(x > 0, x, NEG_SLOPE * x)


def dfnet_kernel(sv_ref, cv_ref,
                 w_in_ref, b1_ref, wa_ref, wt_ref,
                 wf1_ref, bf1_ref, wf2_ref, bf2_ref,
                 out_ref, pad1_ref, pad3_ref):
    H, L = sv_ref.shape
    L3 = 3 * L
    bf16 = jnp.bfloat16
    f32 = jnp.float32

    sv = sv_ref[...].astype(bf16)                     # (H, L) lane = x*C + c
    cv = cv_ref[...].astype(bf16)                     # (H, L)

    # ---- conv_1 + sv half of conv_f1[0]: one (H, 2L)@(2L, 2L) MXU dot -------
    #      W_in = [[Bcv, 0], [Bsv, Bf1sv]]   (block-diag 1x1 weights)
    t = jnp.dot(jnp.concatenate([cv, sv], axis=1), w_in_ref[...],
                preferred_element_type=f32)           # (H, 2L)
    buf = _lrelu(t[:, :L] + b1_ref[...])              # (H, L) f32  conv_1 output
    fsv = t[:, L:]                                    # (H, L) f32  sv @ Wf1_sv

    # ---- y-padded scratch for the dilated taps; zero only the 4 halo rows
    #      actually read (per step: scratch is per-core under "parallel").
    pad1_ref[PY - 4:PY, :] = jnp.zeros((4, L), f32)
    pad1_ref[PY + H:PY + H + 4, :] = jnp.zeros((4, L), f32)
    pad1_ref[PY:PY + H, :] = buf

    # ---- fused ResASPP branches: 7 y-shifted slabs -> (H, 7L) @ (7L, 3L) ----
    #      (x-shifts / x zero padding live inside the banded weight; the lane
    #       concat of whole 128-wide slabs is free placement, no packing)
    lhs_a = jnp.concatenate(
        [pad1_ref[PY + s:PY + s + H, :].astype(bf16) for s in SHIFTS], axis=1)
    a_cat = _lrelu(jnp.dot(lhs_a, wa_ref[...],
                           preferred_element_type=f32))          # (H, 3L)

    pad3_ref[PY - 1:PY, :] = jnp.zeros((1, L3), f32)
    pad3_ref[PY + H:PY + H + 1, :] = jnp.zeros((1, L3), f32)
    pad3_ref[PY:PY + H, :] = a_cat

    # ---- conv_t (3x3 dil 1, 3C->C) + residual: one (H, 9L) @ (9L, L) dot ----
    lhs_t = jnp.concatenate(
        [pad3_ref[PY + s:PY + s + H, :].astype(bf16) for s in (-1, 0, 1)], axis=1)
    aspp = buf + jnp.dot(lhs_t, wt_ref[...],
                         preferred_element_type=f32)             # (H, L)

    # ---- conv_f1: 1x1 (2C->C, bias) + lrelu -> 1x1 (C->C, bias) -------------
    f = _lrelu(fsv + jnp.dot(aspp.astype(bf16), wf1_ref[...],
                             preferred_element_type=f32) + bf1_ref[...])
    f = jnp.dot(f.astype(bf16), wf2_ref[...],
                preferred_element_type=f32) + bf2_ref[...]

    # TODO(synk): parallax_transformer1..4 / pos_encoding undefined -> identity.
    out_ref[...] = f.astype(out_ref.dtype)


# ----------------------------------------------------------------------------
# Wrapper: builds the lane-dense block-diagonal / banded weights once and
# launches the kernel on a (N, K) parallel grid.
# ----------------------------------------------------------------------------
def _shift_mat(W, off):
    """S[x_in, x_out] = 1 iff x_in == x_out + off and 0 <= x_in < W (zero pad)."""
    s = np.zeros((W, W), np.float32)
    for x in range(W):
        xin = x + off
        if 0 <= xin < W:
            s[xin, x] = 1.0
    return s


def _band_1x1(w, W):
    """(C,C) 1x1 weight -> (W*C, W*C) block-diagonal lane-dense weight."""
    return jnp.kron(jnp.eye(W, dtype=w.dtype), w)


def _band_3x3(w9, W, dil):
    """(3,3,Cin,Cout) conv weight -> 3 banded (W*Cin, W*Cout) blocks (one per ky);
    x shifts and x zero padding are folded into the band."""
    blocks = []
    for ky in range(3):
        blk = 0.
        for kx in range(3):
            s = jnp.asarray(_shift_mat(W, (kx - 1) * dil), w9.dtype)
            blk = blk + jnp.kron(s, w9[ky, kx])
        blocks.append(blk)
    return blocks


def dfnet_forward(fea_sv, fea_cv, params):
    N, K, H, W, C = fea_sv.shape
    L = W * C
    assert H % 8 == 0, "H must be a multiple of 8"
    assert L % 128 == 0, "W*C must be a multiple of 128 for the lane-dense layout"
    bf16 = jnp.bfloat16
    f32 = jnp.float32

    # 1x1 convs -> block-diagonal (L, L) lane-dense weights
    b_cv = _band_1x1(params['w1_cv'], W)
    b_sv = _band_1x1(params['w1_sv'], W)
    b_f1sv = _band_1x1(params['wf1_sv'], W)
    b_f1as = _band_1x1(params['wf1_as'], W)
    b_f2 = _band_1x1(params['wf2'], W)

    # conv_1 + sv half of conv_f1[0] fused: concat(cv, sv) @ [[Bcv, 0],[Bsv, Bf1sv]]
    w_in = jnp.concatenate(
        [jnp.concatenate([b_cv, jnp.zeros((L, L), f32)], axis=1),
         jnp.concatenate([b_sv, b_f1sv], axis=1)], axis=0)           # (2L, 2L)

    # fused ResASPP branches: (7L, 3L) banded block-diag(wa1, wa2, wa3)
    wa = jnp.zeros((7 * L, 3 * L), f32)
    for bi, (name, dil) in enumerate((('wa1', 1), ('wa2', 2), ('wa3', 4))):
        w9 = params[name].reshape(3, 3, C, C)
        blocks = _band_3x3(w9, W, dil)
        for ky in range(3):
            j = SHIFTS.index((ky - 1) * dil)
            wa = wa.at[j * L:(j + 1) * L, bi * L:(bi + 1) * L].add(blocks[ky])

    # conv_t: (9L, L) banded weight; input lane layout = a1|a2|a3 branch blocks
    wt9 = params['wt'].reshape(3, 3, 3 * C, C)
    wt = jnp.zeros((9 * L, L), f32)
    for bi in range(3):
        blocks = _band_3x3(wt9[:, :, bi * C:(bi + 1) * C, :], W, 1)
        for ky in range(3):
            r0 = (ky * 3 + bi) * L
            wt = wt.at[r0:r0 + L, :].add(blocks[ky])

    # biases tiled to lane-dense rows (lane = x*C + c)
    b1 = jnp.tile(params['b1'], W).reshape(1, L)
    bf1 = jnp.tile(params['bf1'], W).reshape(1, L)
    bf2 = jnp.tile(params['bf2'], W).reshape(1, L)

    weights = [w_in.astype(bf16), b1,
               wa.astype(bf16), wt.astype(bf16),
               b_f1as.astype(bf16), bf1,
               b_f2.astype(bf16), bf2]

    # lane-dense views of the activations (free reshapes)
    sv2 = fea_sv.reshape(N, K, H, L)
    cv2 = fea_cv.reshape(N, H, L)

    def const_spec(arr):
        nd = arr.ndim
        return pl.BlockSpec(arr.shape, lambda n, k, nd=nd: (0,) * nd)

    in_specs = [
        pl.BlockSpec((None, None, H, L), lambda n, k: (n, k, 0, 0)),
        pl.BlockSpec((None, H, L), lambda n, k: (n, 0, 0)),   # constant over k
    ] + [const_spec(w) for w in weights]

    out_spec = pl.BlockSpec((None, None, H, L), lambda n, k: (n, k, 0, 0))

    out = pl.pallas_call(
        dfnet_kernel,
        out_shape=jax.ShapeDtypeStruct((N, K, H, L), jnp.float32),
        grid_spec=pltpu.PrefetchScalarGridSpec(
            num_scalar_prefetch=0,
            grid=(N, K),
            in_specs=in_specs,
            out_specs=out_spec,
            scratch_shapes=[
                pltpu.VMEM((H + 2 * PY, L), jnp.float32),        # lrelu(conv_1) slab
                pltpu.VMEM((H + 2 * PY, 3 * L), jnp.float32),    # fused ASPP slab
            ],
        ),
        compiler_params=pltpu.CompilerParams(
            dimension_semantics=("parallel", "parallel"),
            vmem_limit_bytes=32 * 1024 * 1024,
        ),
    )(sv2, cv2, *weights)

    return out.reshape(N, K, H, W, C)


# ----------------------------------------------------------------------------
# Parameters + pure-JAX f32 reference (same semantics as the torch DFNet
# forward with the undefined transformers treated as identity).
# ----------------------------------------------------------------------------
def init_params(key, C):
    ks = jax.random.split(key, 12)

    def w(k, shape, fan_in):
        return jax.random.normal(k, shape, jnp.float32) / jnp.sqrt(float(fan_in))

    p = {}
    p['w1_cv'] = w(ks[0], (C, C), 2 * C)          # conv_1 weight (cv half)
    p['w1_sv'] = w(ks[1], (C, C), 2 * C)          # conv_1 weight (sv half)
    p['b1'] = 0.01 * jax.random.normal(ks[2], (C,), jnp.float32)
    p['wa1'] = w(ks[3], (9, C, C), 9 * C)         # ResASPP conv_1 (dil 1)
    p['wa2'] = w(ks[4], (9, C, C), 9 * C)         # ResASPP conv_2 (dil 2)
    p['wa3'] = w(ks[5], (9, C, C), 9 * C)         # ResASPP conv_3 (dil 4)
    p['wt'] = w(ks[6], (9, 3 * C, C), 27 * C)     # ResASPP conv_t (3C -> C)
    p['wf1_sv'] = w(ks[7], (C, C), 2 * C)         # conv_f1[0] (sv half)
    p['wf1_as'] = w(ks[8], (C, C), 2 * C)         # conv_f1[0] (aspp half)
    p['bf1'] = 0.01 * jax.random.normal(ks[9], (C,), jnp.float32)
    p['wf2'] = w(ks[10], (C, C), C)               # conv_f1[2]
    p['bf2'] = 0.01 * jax.random.normal(ks[11], (C,), jnp.float32)
    return p


def ref_forward(fea_sv, fea_cv, p):
    def lrelu(x):
        return jnp.where(x > 0, x, NEG_SLOPE * x)

    def conv1x1(x, w):
        return jnp.einsum('nhwc,cd->nhwd', x, w)

    def conv3x3(x, w9, d):
        ci, co = w9.shape[1], w9.shape[2]
        w = w9.reshape(3, 3, ci, co)
        return jax.lax.conv_general_dilated(
            x, w, (1, 1), ((d, d), (d, d)), rhs_dilation=(d, d),
            dimension_numbers=('NHWC', 'HWIO', 'NHWC'))

    N, K, H, W, C = fea_sv.shape
    outs = []
    for i in range(K):
        sv = fea_sv[:, i]
        buf = lrelu(conv1x1(fea_cv, p['w1_cv']) + conv1x1(sv, p['w1_sv'])
                    + p['b1'].reshape(1, 1, 1, -1))
        a1 = lrelu(conv3x3(buf, p['wa1'], 1))
        a2 = lrelu(conv3x3(buf, p['wa2'], 2))
        a3 = lrelu(conv3x3(buf, p['wa3'], 4))
        aspp = buf + conv3x3(jnp.concatenate([a1, a2, a3], axis=-1), p['wt'], 1)
        f = lrelu(conv1x1(sv, p['wf1_sv']) + conv1x1(aspp, p['wf1_as'])
                  + p['bf1'].reshape(1, 1, 1, -1))
        f = conv1x1(f, p['wf2']) + p['bf2'].reshape(1, 1, 1, -1)
        outs.append(f)
    return jnp.stack(outs, axis=1)


if __name__ == "__main__":
    C, N, K, H, W = 8, 2, 4, 16, 16          # W*C = 128 (lane-dense)
    key = jax.random.PRNGKey(0)
    k_sv, k_cv, k_p = jax.random.split(key, 3)
    fea_sv = jax.random.normal(k_sv, (N, K, H, W, C), jnp.float32)
    fea_cv = jax.random.normal(k_cv, (N, H, W, C), jnp.float32)
    params = init_params(k_p, C)

    out = jax.block_until_ready(dfnet_forward(fea_sv, fea_cv, params))
    ref = ref_forward(fea_sv, fea_cv, params)

    assert out.shape == (N, K, H, W, C), out.shape
    # bf16 MXU inputs (f32 accumulation) -> tolerance loosened vs pure-f32 ref
    if not jnp.allclose(out, ref, atol=5e-2, rtol=5e-2):
        raise AssertionError(
            f"mismatch vs reference, max abs err = {jnp.max(jnp.abs(out - ref))}")
    print("KERNEL_OK")
</pallas_src>

<mosaic_0001>
module attributes {stable_mosaic.version = 11 : i64} {
  func.func @dfnet_kernel(%arg0: i32, %arg1: i32, %arg2: memref<1x1x16x128xf32, #tpu.memory_space<vmem>>, %arg3: memref<1x16x128xf32, #tpu.memory_space<vmem>>, %arg4: memref<256x256xbf16, #tpu.memory_space<vmem>>, %arg5: memref<1x128xf32, #tpu.memory_space<vmem>>, %arg6: memref<896x384xbf16, #tpu.memory_space<vmem>>, %arg7: memref<1152x128xbf16, #tpu.memory_space<vmem>>, %arg8: memref<128x128xbf16, #tpu.memory_space<vmem>>, %arg9: memref<1x128xf32, #tpu.memory_space<vmem>>, %arg10: memref<128x128xbf16, #tpu.memory_space<vmem>>, %arg11: memref<1x128xf32, #tpu.memory_space<vmem>>, %arg12: memref<1x1x16x128xf32, #tpu.memory_space<vmem>>, %arg13: memref<32x128xf32, #tpu.memory_space<vmem>>, %arg14: memref<32x384xf32, #tpu.memory_space<vmem>>) attributes {dimension_semantics = [#tpu.dimension_semantics<parallel>, #tpu.dimension_semantics<parallel>], iteration_bounds = array<i64: 2, 4>, scalar_prefetch = 0 : i64, scratch_operands = 2 : i64, tpu.core_type = #tpu.core_type<tc>, window_params = [{transform_indices = @transform_0, window_bounds = array<i64: 1, 1, 16, 128>}, {transform_indices = @transform_1, window_bounds = array<i64: 1, 16, 128>}, {pipeline_mode = #tpu.pipeline_mode<synchronous>, transform_indices = @transform_2, window_bounds = array<i64: 256, 256>}, {pipeline_mode = #tpu.pipeline_mode<synchronous>, transform_indices = @transform_3, window_bounds = array<i64: 1, 128>}, {pipeline_mode = #tpu.pipeline_mode<synchronous>, transform_indices = @transform_4, window_bounds = array<i64: 896, 384>}, {pipeline_mode = #tpu.pipeline_mode<synchronous>, transform_indices = @transform_5, window_bounds = array<i64: 1152, 128>}, {pipeline_mode = #tpu.pipeline_mode<synchronous>, transform_indices = @transform_6, window_bounds = array<i64: 128, 128>}, {pipeline_mode = #tpu.pipeline_mode<synchronous>, transform_indices = @transform_7, window_bounds = array<i64: 1, 128>}, {pipeline_mode = #tpu.pipeline_mode<synchronous>, transform_indices = @transform_8, window_bounds = array<i64: 128, 128>}, {pipeline_mode = #tpu.pipeline_mode<synchronous>, transform_indices = @transform_9, window_bounds = array<i64: 1, 128>}, {transform_indices = @transform_10, window_bounds = array<i64: 1, 1, 16, 128>}]} {
    %c0 = arith.constant 0 : index
    %c0_0 = arith.constant 0 : index
    %c0_1 = arith.constant 0 : index
    %c0_2 = arith.constant 0 : index
    %0 = vector.load %arg2[%c0, %c0_0, %c0_1, %c0_2] : memref<1x1x16x128xf32, #tpu.memory_space<vmem>>, vector<1x1x16x128xf32>
    %1 = vector.shape_cast %0 : vector<1x1x16x128xf32> to vector<16x128xf32>
    %2 = arith.truncf %1 : vector<16x128xf32> to vector<16x128xbf16>
    %c0_3 = arith.constant 0 : index
    %c0_4 = arith.constant 0 : index
    %c0_5 = arith.constant 0 : index
    %3 = vector.load %arg3[%c0_3, %c0_4, %c0_5] : memref<1x16x128xf32, #tpu.memory_space<vmem>>, vector<1x16x128xf32>
    %4 = vector.shape_cast %3 : vector<1x16x128xf32> to vector<16x128xf32>
    %5 = arith.truncf %4 : vector<16x128xf32> to vector<16x128xbf16>
    %6 = tpu.concatenate %5, %2 in 1 : vector<16x128xbf16>, vector<16x128xbf16> -> vector<16x256xbf16>
    %c0_6 = arith.constant 0 : index
    %c0_7 = arith.constant 0 : index
    %7 = vector.load %arg4[%c0_6, %c0_7] : memref<256x256xbf16, #tpu.memory_space<vmem>>, vector<256x256xbf16>
    %cst = arith.constant dense<0.000000e+00> : vector<16x256xf32>
    %8 = tpu.matmul %6, %7, %cst {dimension_numbers = #tpu.dot_dimension_numbers<[1], [0], [0], [1], [0, 0, 1, 1], [], []>} : vector<16x256xbf16>, vector<256x256xbf16>, vector<16x256xf32> -> vector<16x256xf32>
    %9 = vector.extract_strided_slice %8 {offsets = [0, 0], sizes = [16, 128], strides = [1, 1]} : vector<16x256xf32> to vector<16x128xf32>
    %c0_8 = arith.constant 0 : index
    %c0_9 = arith.constant 0 : index
    %10 = vector.load %arg5[%c0_8, %c0_9] : memref<1x128xf32, #tpu.memory_space<vmem>>, vector<1x128xf32>
    %11 = vector.broadcast %10 : vector<1x128xf32> to vector<16x128xf32>
    %12 = arith.addf %9, %11 : vector<16x128xf32>
    %cst_10 = arith.constant 0.000000e+00 : f32
    %13 = vector.broadcast %cst_10 : f32 to vector<16x128xf32>
    %14 = arith.cmpf ogt, %12, %13 : vector<16x128xf32>
    %cst_11 = arith.constant 1.000000e-01 : f32
    %15 = vector.broadcast %cst_11 : f32 to vector<16x128xf32>
    %16 = arith.mulf %15, %12 : vector<16x128xf32>
    %17 = arith.select %14, %12, %16 : vector<16x128xi1>, vector<16x128xf32>
    %18 = vector.extract_strided_slice %8 {offsets = [0, 128], sizes = [16, 128], strides = [1, 1]} : vector<16x256xf32> to vector<16x128xf32>
    %cst_12 = arith.constant 0.000000e+00 : f32
    %19 = vector.broadcast %cst_12 : f32 to vector<4x128xf32>
    %c4 = arith.constant 4 : index
    %c0_13 = arith.constant 0 : index
    %20 = vector.load %arg13[%c4, %c0_13] : memref<32x128xf32, #tpu.memory_space<vmem>>, vector<4x128xf32>
    tpu.vector_store %arg13[%c4, %c0_13], %19 {strides = array<i32>} : memref<32x128xf32, #tpu.memory_space<vmem>>, vector<4x128xf32>,
    %cst_14 = arith.constant 0.000000e+00 : f32
    %21 = vector.broadcast %cst_14 : f32 to vector<4x128xf32>
    %c24 = arith.constant 24 : index
    %c0_15 = arith.constant 0 : index
    %22 = vector.load %arg13[%c24, %c0_15] : memref<32x128xf32, #tpu.memory_space<vmem>>, vector<4x128xf32>
    tpu.vector_store %arg13[%c24, %c0_15], %21 {strides = array<i32>} : memref<32x128xf32, #tpu.memory_space<vmem>>, vector<4x128xf32>,
    %c8 = arith.constant 8 : index
    %c0_16 = arith.constant 0 : index
    %23 = vector.load %arg13[%c8, %c0_16] : memref<32x128xf32, #tpu.memory_space<vmem>>, vector<16x128xf32>
    tpu.vector_store %arg13[%c8, %c0_16], %17 {strides = array<i32>} : memref<32x128xf32, #tpu.memory_space<vmem>>, vector<16x128xf32>,
    %c4_17 = arith.constant 4 : index
    %c0_18 = arith.constant 0 : index
    %24 = vector.load %arg13[%c4_17, %c0_18] : memref<32x128xf32, #tpu.memory_space<vmem>>, vector<16x128xf32>
    %25 = arith.truncf %24 : vector<16x128xf32> to vector<16x128xbf16>
    %c6 = arith.constant 6 : index
    %c0_19 = arith.constant 0 : index
    %26 = vector.load %arg13[%c6, %c0_19] : memref<32x128xf32, #tpu.memory_space<vmem>>, vector<16x128xf32>
    %27 = arith.truncf %26 : vector<16x128xf32> to vector<16x128xbf16>
    %c7 = arith.constant 7 : index
    %c0_20 = arith.constant 0 : index
    %28 = vector.load %arg13[%c7, %c0_20] : memref<32x128xf32, #tpu.memory_space<vmem>>, vector<16x128xf32>
    %29 = arith.truncf %28 : vector<16x128xf32> to vector<16x128xbf16>
    %c8_21 = arith.constant 8 : index
    %c0_22 = arith.constant 0 : index
    %30 = vector.load %arg13[%c8_21, %c0_22] : memref<32x128xf32, #tpu.memory_space<vmem>>, vector<16x128xf32>
    %31 = arith.truncf %30 : vector<16x128xf32> to vector<16x128xbf16>
    %c9 = arith.constant 9 : index
    %c0_23 = arith.constant 0 : index
    %32 = vector.load %arg13[%c9, %c0_23] : memref<32x128xf32, #tpu.memory_space<vmem>>, vector<16x128xf32>
    %33 = arith.truncf %32 : vector<16x128xf32> to vector<16x128xbf16>
    %c10 = arith.constant 10 : index
    %c0_24 = arith.constant 0 : index
    %34 = vector.load %arg13[%c10, %c0_24] : memref<32x128xf32, #tpu.memory_space<vmem>>, vector<16x128xf32>
    %35 = arith.truncf %34 : vector<16x128xf32> to vector<16x128xbf16>
    %c12 = arith.constant 12 : index
    %c0_25 = arith.constant 0 : index
    %36 = vector.load %arg13[%c12, %c0_25] : memref<32x128xf32, #tpu.memory_space<vmem>>, vector<16x128xf32>
    %37 = arith.truncf %36 : vector<16x128xf32> to vector<16x128xbf16>
    %38 = tpu.concatenate %25, %27, %29, %31, %33, %35, %37 in 1 : vector<16x128xbf16>, vector<16x128xbf16>, vector<16x128xbf16>, vector<16x128xbf16>, vector<16x128xbf16>, vector<16x128xbf16>, vector<16x128xbf16> -> vector<16x896xbf16>
    %c0_26 = arith.constant 0 : index
    %c0_27 = arith.constant 0 : index
    %39 = vector.load %arg6[%c0_26, %c0_27] : memref<896x384xbf16, #tpu.memory_space<vmem>>, vector<896x384xbf16>
    %cst_28 = arith.constant dense<0.000000e+00> : vector<16x384xf32>
    %40 = tpu.matmul %38, %39, %cst_28 {dimension_numbers = #tpu.dot_dimension_numbers<[1], [0], [0], [1], [0, 0, 1, 1], [], []>} : vector<16x896xbf16>, vector<896x384xbf16>, vector<16x384xf32> -> vector<16x384xf32>
    %cst_29 = arith.constant 0.000000e+00 : f32
    %41 = vector.broadcast %cst_29 : f32 to vector<16x384xf32>
    %42 = arith.cmpf ogt, %40, %41 : vector<16x384xf32>
    %cst_30 = arith.constant 1.000000e-01 : f32
    %43 = vector.broadcast %cst_30 : f32 to vector<16x384xf32>
    %44 = arith.mulf %43, %40 : vector<16x384xf32>
    %45 = arith.select %42, %40, %44 : vector<16x384xi1>, vector<16x384xf32>
    %cst_31 = arith.constant 0.000000e+00 : f32
    %46 = vector.broadcast %cst_31 : f32 to vector<1x384xf32>
    %c7_32 = arith.constant 7 : index
    %c0_33 = arith.constant 0 : index
    %47 = vector.load %arg14[%c7_32, %c0_33] : memref<32x384xf32, #tpu.memory_space<vmem>>, vector<1x384xf32>
    tpu.vector_store %arg14[%c7_32, %c0_33], %46 {strides = array<i32>} : memref<32x384xf32, #tpu.memory_space<vmem>>, vector<1x384xf32>,
    %cst_34 = arith.constant 0.000000e+00 : f32
    %48 = vector.broadcast %cst_34 : f32 to vector<1x384xf32>
    %c24_35 = arith.constant 24 : index
    %c0_36 = arith.constant 0 : index
    %49 = vector.load %arg14[%c24_35, %c0_36] : memref<32x384xf32, #tpu.memory_space<vmem>>, vector<1x384xf32>
    tpu.vector_store %arg14[%c24_35, %c0_36], %48 {strides = array<i32>} : memref<32x384xf32, #tpu.memory_space<vmem>>, vector<1x384xf32>,
    %c8_37 = arith.constant 8 : index
    %c0_38 = arith.constant 0 : index
    %50 = vector.load %arg14[%c8_37, %c0_38] : memref<32x384xf32, #tpu.memory_space<vmem>>, vector<16x384xf32>
    tpu.vector_store %arg14[%c8_37, %c0_38], %45 {strides = array<i32>} : memref<32x384xf32, #tpu.memory_space<vmem>>, vector<16x384xf32>,
    %c7_39 = arith.constant 7 : index
    %c0_40 = arith.constant 0 : index
    %51 = vector.load %arg14[%c7_39, %c0_40] : memref<32x384xf32, #tpu.memory_space<vmem>>, vector<16x384xf32>
    %52 = arith.truncf %51 : vector<16x384xf32> to vector<16x384xbf16>
    %c8_41 = arith.constant 8 : index
    %c0_42 = arith.constant 0 : index
    %53 = vector.load %arg14[%c8_41, %c0_42] : memref<32x384xf32, #tpu.memory_space<vmem>>, vector<16x384xf32>
    %54 = arith.truncf %53 : vector<16x384xf32> to vector<16x384xbf16>
    %c9_43 = arith.constant 9 : index
    %c0_44 = arith.constant 0 : index
    %55 = vector.load %arg14[%c9_43, %c0_44] : memref<32x384xf32, #tpu.memory_space<vmem>>, vector<16x384xf32>
    %56 = arith.truncf %55 : vector<16x384xf32> to vector<16x384xbf16>
    %57 = tpu.concatenate %52, %54, %56 in 1 : vector<16x384xbf16>, vector<16x384xbf16>, vector<16x384xbf16> -> vector<16x1152xbf16>
    %c0_45 = arith.constant 0 : index
    %c0_46 = arith.constant 0 : index
    %58 = vector.load %arg7[%c0_45, %c0_46] : memref<1152x128xbf16, #tpu.memory_space<vmem>>, vector<1152x128xbf16>
    %cst_47 = arith.constant dense<0.000000e+00> : vector<16x128xf32>
    %59 = tpu.matmul %57, %58, %cst_47 {dimension_numbers = #tpu.dot_dimension_numbers<[1], [0], [0], [1], [0, 0, 1, 1], [], []>} : vector<16x1152xbf16>, vector<1152x128xbf16>, vector<16x128xf32> -> vector<16x128xf32>
    %60 = arith.addf %17, %59 : vector<16x128xf32>
    %61 = arith.truncf %60 : vector<16x128xf32> to vector<16x128xbf16>
    %c0_48 = arith.constant 0 : index
    %c0_49 = arith.constant 0 : index
    %62 = vector.load %arg8[%c0_48, %c0_49] : memref<128x128xbf16, #tpu.memory_space<vmem>>, vector<128x128xbf16>
    %cst_50 = arith.constant dense<0.000000e+00> : vector<16x128xf32>
    %63 = tpu.matmul %61, %62, %cst_50 {dimension_numbers = #tpu.dot_dimension_numbers<[1], [0], [0], [1], [0, 0, 1, 1], [], []>} : vector<16x128xbf16>, vector<128x128xbf16>, vector<16x128xf32> -> vector<16x128xf32>
    %64 = arith.addf %18, %63 : vector<16x128xf32>
    %c0_51 = arith.constant 0 : index
    %c0_52 = arith.constant 0 : index
    %65 = vector.load %arg9[%c0_51, %c0_52] : memref<1x128xf32, #tpu.memory_space<vmem>>, vector<1x128xf32>
    %66 = vector.broadcast %65 : vector<1x128xf32> to vector<16x128xf32>
    %67 = arith.addf %64, %66 : vector<16x128xf32>
    %cst_53 = arith.constant 0.000000e+00 : f32
    %68 = vector.broadcast %cst_53 : f32 to vector<16x128xf32>
    %69 = arith.cmpf ogt, %67, %68 : vector<16x128xf32>
    %cst_54 = arith.constant 1.000000e-01 : f32
    %70 = vector.broadcast %cst_54 : f32 to vector<16x128xf32>
    %71 = arith.mulf %70, %67 : vector<16x128xf32>
    %72 = arith.select %69, %67, %71 : vector<16x128xi1>, vector<16x128xf32>
    %73 = arith.truncf %72 : vector<16x128xf32> to vector<16x128xbf16>
    %c0_55 = arith.constant 0 : index
    %c0_56 = arith.constant 0 : index
    %74 = vector.load %arg10[%c0_55, %c0_56] : memref<128x128xbf16, #tpu.memory_space<vmem>>, vector<128x128xbf16>
    %cst_57 = arith.constant dense<0.000000e+00> : vector<16x128xf32>
    %75 = tpu.matmul %73, %74, %cst_57 {dimension_numbers = #tpu.dot_dimension_numbers<[1], [0], [0], [1], [0, 0, 1, 1], [], []>} : vector<16x128xbf16>, vector<128x128xbf16>, vector<16x128xf32> -> vector<16x128xf32>
    %c0_58 = arith.constant 0 : index
    %c0_59 = arith.constant 0 : index
    %76 = vector.load %arg11[%c0_58, %c0_59] : memref<1x128xf32, #tpu.memory_space<vmem>>, vector<1x128xf32>
    %77 = vector.broadcast %76 : vector<1x128xf32> to vector<16x128xf32>
    %78 = arith.addf %75, %77 : vector<16x128xf32>
    %c0_60 = arith.constant 0 : index
    %c0_61 = arith.constant 0 : index
    %c0_62 = arith.constant 0 : index
    %c0_63 = arith.constant 0 : index
    %79 = vector.load %arg12[%c0_60, %c0_61, %c0_62, %c0_63] : memref<1x1x16x128xf32, #tpu.memory_space<vmem>>, vector<1x1x16x128xf32>
    %80 = vector.shape_cast %79 : vector<1x1x16x128xf32> to vector<16x128xf32>
    %81 = vector.shape_cast %78 : vector<16x128xf32> to vector<1x1x16x128xf32>
    tpu.vector_store %arg12[%c0_60, %c0_61, %c0_62, %c0_63], %81 {strides = array<i32>} : memref<1x1x16x128xf32, #tpu.memory_space<vmem>>, vector<1x1x16x128xf32>,
    return
  }
  func.func @transform_0(%arg0: i32, %arg1: i32) -> (i32, i32, i32, i32) {
    %c0_i32 = arith.constant 0 : i32
    %c0_i32_0 = arith.constant 0 : i32
    %c0_i32_1 = arith.constant 0 : i32
    return %arg0, %arg1, %c0_i32, %c0_i32_0 : i32, i32, i32, i32
  }
  func.func @transform_1(%arg0: i32, %arg1: i32) -> (i32, i32, i32) {
    %c0_i32 = arith.constant 0 : i32
    %c0_i32_0 = arith.constant 0 : i32
    %c0_i32_1 = arith.constant 0 : i32
    return %arg0, %c0_i32, %c0_i32_0 : i32, i32, i32
  }
  func.func @transform_2(%arg0: i32, %arg1: i32) -> (i32, i32) {
    %c0_i32 = arith.constant 0 : i32
    %c0_i32_0 = arith.constant 0 : i32
    %c0_i32_1 = arith.constant 0 : i32
    return %c0_i32, %c0_i32_0 : i32, i32
  }
  func.func @transform_3(%arg0: i32, %arg1: i32) -> (i32, i32) {
    %c0_i32 = arith.constant 0 : i32
    %c0_i32_0 = arith.constant 0 : i32
    %c0_i32_1 = arith.constant 0 : i32
    return %c0_i32, %c0_i32_0 : i32, i32
  }
  func.func @transform_4(%arg0: i32, %arg1: i32) -> (i32, i32) {
    %c0_i32 = arith.constant 0 : i32
    %c0_i32_0 = arith.constant 0 : i32
    %c0_i32_1 = arith.constant 0 : i32
    return %c0_i32, %c0_i32_0 : i32, i32
  }
  func.func @transform_5(%arg0: i32, %arg1: i32) -> (i32, i32) {
    %c0_i32 = arith.constant 0 : i32
    %c0_i32_0 = arith.constant 0 : i32
    %c0_i32_1 = arith.constant 0 : i32
    return %c0_i32, %c0_i32_0 : i32, i32
  }
  func.func @transform_6(%arg0: i32, %arg1: i32) -> (i32, i32) {
    %c0_i32 = arith.constant 0 : i32
    %c0_i32_0 = arith.constant 0 : i32
    %c0_i32_1 = arith.constant 0 : i32
    return %c0_i32, %c0_i32_0 : i32, i32
  }
  func.func @transform_7(%arg0: i32, %arg1: i32) -> (i32, i32) {
    %c0_i32 = arith.constant 0 : i32
    %c0_i32_0 = arith.constant 0 : i32
    %c0_i32_1 = arith.constant 0 : i32
    return %c0_i32, %c0_i32_0 : i32, i32
  }
  func.func @transform_8(%arg0: i32, %arg1: i32) -> (i32, i32) {
    %c0_i32 = arith.constant 0 : i32
    %c0_i32_0 = arith.constant 0 : i32
    %c0_i32_1 = arith.constant 0 : i32
    return %c0_i32, %c0_i32_0 : i32, i32
  }
  func.func @transform_9(%arg0: i32, %arg1: i32) -> (i32, i32) {
    %c0_i32 = arith.constant 0 : i32
    %c0_i32_0 = arith.constant 0 : i32
    %c0_i32_1 = arith.constant 0 : i32
    return %c0_i32, %c0_i32_0 : i32, i32
  }
  func.func @transform_10(%arg0: i32, %arg1: i32) -> (i32, i32, i32, i32) {
    %c0_i32 = arith.constant 0 : i32
    %c0_i32_0 = arith.constant 0 : i32
    %c0_i32_1 = arith.constant 0 : i32
    return %arg0, %arg1, %c0_i32, %c0_i32_0 : i32, i32, i32, i32
  }
}

</mosaic_0001>

<bundles_post_ra>
// kernel: tpu_custom_call.1
= control target key start
LH: loop header
LB: loop body
LE: loop exit
PB: predicated region body
PF: predicated region fallthrough
CT: control target
= control target key end

     0   :  { %s6075_s0 = inlined_call_operand.hbm [shape: f32[2,4,16,128], index: 0, kind: input, shape index: {}]   ;;  %s6076_s1 = inlined_call_operand.hbm [shape: f32[2,16,128], index: 1, kind: input, shape index: {}]   ;;  %s6077_s2 = inlined_call_operand.hbm [shape: bf16[256,256], index: 2, kind: input, shape index: {}]   ;;  %s6078_s3 = inlined_call_operand.vmem [shape: f32[1,128], index: 3, kind: input, shape index: {}]   ;;  %s6079_s4 = inlined_call_operand.hbm [shape: bf16[896,384], index: 4, kind: input, shape index: {}]   ;;  %s6080_s5 = inlined_call_operand.hbm [shape: bf16[1152,128], index: 5, kind: input, shape index: {}]   ;;  %s6081_s6 = inlined_call_operand.hbm [shape: bf16[128,128], index: 6, kind: input, shape index: {}]   ;;  %s6082_s7 = inlined_call_operand.vmem [shape: f32[1,128], index: 7, kind: input, shape index: {}]   ;;  %s6083_s8 = inlined_call_operand.hbm [shape: bf16[128,128], index: 8, kind: input, shape index: {}]   ;;  %s6084_s9 = inlined_call_operand.vmem [shape: f32[1,128], index: 9, kind: input, shape index: {}]   ;;  %s6085_s10 = inlined_call_operand.hbm [shape: f32[2,4,16,128], index: 10, kind: output, shape index: {}]  }
   0x1   :  { %6094 = sst [smem:[#allocation28_spill]] %s6076_s1 }
   0x2   :  { %6095 = sst [smem:[#allocation29_spill]] %s6077_s2 }
   0x3   :  { %6096 = sst [smem:[#allocation30_spill]] %s6078_s3 }
   0x4   :  { %6097 = sst [smem:[#allocation31_spill]] %s6079_s4 }
   0x5   :  { %6098 = sst [smem:[#allocation32_spill]] %s6080_s5 }
   0x6   :  { %6099 = sst [smem:[#allocation33_spill]] %s6081_s6 }
   0x7   :  { %6100 = sst [smem:[#allocation34_spill]] %s6082_s7 }
   0x8   :  { %6101 = sst [smem:[#allocation35_spill]] %s6083_s8 }
   0x9   :  { %6102 = sst [smem:[#allocation36_spill]] %s6084_s9 }
   0xa   :  { %6103 = sst [smem:[#allocation37_spill]] %s6085_s10 }
   0xb   :  { %15 = vsyncpa [#allocation5], 0 }
   0xc   :  { %17 = vsyncpa [#allocation5 + $0x1], 0 }
   0xd   :  { %18 = vsyncpa [#allocation8], 0 }
   0xe   :  { %20 = vsyncpa [#allocation8 + $0x1], 0 }
   0xf   :  { %21 = vsyncpa [#allocation11], 0 }
  0x10   :  { %22 = vsyncpa [#allocation14], 0 }
  0x11   :  { %23 = vsyncpa [#allocation6], 0 }
  0x12   :  { %25 = vsyncpa [#allocation6 + $0x1], 0  ;;  %s5701_s13 = smov 0   ;;  %s5703_s14 = smov 0  }
  0x13   :  { %s5705_s15 = smov 0   ;;  %s5707_s16 = smov 0  }
  0x14   :  { %s5709_s17 = smov 0   ;;  %s5711_s18 = smov 0  }
  0x15   :  { %s5713_s19 = smov 0   ;;  %s5715_s20 = smov 0  }
  0x16   :  { %s5717_s21 = smov 0   ;;  %s5719_s22 = smov 0  }
  0x17   :  { %s5721_s23 = smov 0  }
  0x18 LB: > { %6104 = sst [smem:[#allocation23_spill]] %s5614_s19  ;;  %s5757_s24 = sadd.s32 4294967295, %s5630_s23   ;;  %s5630_s23 = sphi %s5721_s23, %s31_s23   ;;  %s5626_s22 = sphi %s5719_s22, %s6142_s22   ;;  %s5622_s21 = sphi %s5717_s21, %s6141_s21   ;;  %s5618_s20 = sphi %s5715_s20, %s6140_s20   ;;  %s5614_s19 = sphi %s5713_s19, %s6139_s19   ;;  %s5610_s18 = sphi %s5711_s18, %s6138_s18   ;;  %s5606_s17 = sphi %s5709_s17, %s6137_s17   ;;  %s5602_s16 = sphi %s5707_s16, %s6136_s16   ;;  %s5598_s15 = sphi %s5705_s15, %s6135_s15   ;;  %s5594_s14 = sphi %s5703_s14, %s6134_s14   ;;  %s5590_s13 = sphi %s5701_s13, %s6133_s13  }
  0x19   : > { %6105 = sst [smem:[#allocation24_spill]] %s5618_s20  ;;  %p3640_p0 = scmp.ge.s32.totalorder %s5630_s23, 1 }
  0x1a   : > { %p66_p1 = scmp.eq.s32.totalorder %s5757_s24, 0  ;;  %p298_p2 = scmp.lt.s32.totalorder %s5630_s23, 9 }
  0x1b   : > { %s6106_s2 = sld [smem:[#allocation29_spill]]  ;;  %s5632_s29 = smov [#allocation9]  }
  0x1c   : > { %p5765_p3 = pnand %p3640_p0, %p298_p2  ;;  %s311_s30 = sshll.u32 %s5632_s29, 4  ;;  %s312_s30 = int_to_ptr.vmem [resolvable:$true] %s311_s30 }
  0x1d   : > { %s6110_s4 = sld [smem:[#allocation31_spill]]  ;;  %s6088_s26 = smov 128  }
  0x1e   : > { %s6107_s28 = scalar_select %p5765_p3, 1, 0 }
  0x1f   : > { %p5136_p4 = pneg %p5765_p3  ;;  %s5635_s29 = smov [#allocation10]  }
  0x20   : > { %6108 = sst [smem:[#allocation25_spill]] %s6107_s28  ;;  %s328_s9 = sshll.u32 %s5635_s29, 4  ;;  %s329_s9 = int_to_ptr.vmem [resolvable:$true] %s328_s9 }
  0x21   : > { %s309_s27 = sshll.u32 %s6106_s2, 4  ;;  %p5773_p5 = pnand %p5136_p4, %p66_p1  ;;  %s310_s27 = int_to_ptr.hbm [resolvable:$true] %s309_s27 }
  0x22   : > { %s6090_s2 = smov 8   ;;  %s5636_s7 = smov 192  }
  0x23   : > { %s326_s25 = sshll.u32 %s6110_s4, 4  ;;  %s5637_s20 = smov 12   ;;  %s327_s25 = int_to_ptr.hbm [resolvable:$true] %s326_s25 }
  0x24   : > { %5139 = dma.hbm_to_vmem [thread:$0]  (!%p5773_p5), %s310_s27, 4096, %s312_s30, [#allocation8], %s6088_s26, %s6088_s26, %s6090_s2  }
  0x25   : > { %5142 = dma.hbm_to_vmem [thread:$0]  (!%p5773_p5), %s327_s25, 21504, %s329_s9, [#allocation11], %s5636_s7, %s5636_s7, %s5637_s20  }
  0x26   : > { %s6111_s6 = sld [smem:[#allocation33_spill]]  ;;  %s5638_s19 = smov [#allocation13]  }
  0x27   : > { %s356_s3 = sshll.u32 %s5638_s19, 4  ;;  %s6112_s5 = sld [smem:[#allocation32_spill]]  ;;  %s357_s3 = int_to_ptr.vmem [resolvable:$true] %s356_s3 }
  0x28   : > { %s5639_s30 = smov 64   ;;  %s5640_s29 = smov 4  }
  0x29   : > { %s5641_s7 = smov [#allocation12]   ;;  %s6113_s8 = sld [smem:[#allocation35_spill]] }
  0x2a   : > { %s342_s9 = sshll.u32 %s5641_s7, 4  ;;  %s5642_s1 = smov [#allocation15]   ;;  %s343_s9 = int_to_ptr.vmem [resolvable:$true] %s342_s9 }
  0x2b   : > { %s40_s28 = sadd.s32 1, %s5622_s21  ;;  %s43_s10 = sadd.s32 1, %s5626_s22 }
  0x2c   : > { %s354_s4 = sshll.u32 %s6111_s6, 4  ;;  %p41_p6 = scmp.ge.s32.totalorder %s40_s28, 4  ;;  %s355_s4 = int_to_ptr.hbm [resolvable:$true] %s354_s4 }
  0x2d   : > { %s340_s27 = sshll.u32 %s6112_s5, 4  ;;  %s52_s12 = sadd.s32 1, %s5610_s18  ;;  %s341_s27 = int_to_ptr.hbm [resolvable:$true] %s340_s27 }
  0x2e   : > { %5148 = dma.hbm_to_vmem [thread:$0]  (!%p5773_p5), %s355_s4, 1024, %s357_s3, [#allocation14], %s5639_s30, %s5639_s30, %s5640_s29  }
  0x2f   : > { %s371_s25 = sshll.u32 %s6113_s8, 4  ;;  %s373_s3 = sshll.u32 %s5642_s1, 4  ;;  %s372_s25 = int_to_ptr.hbm [resolvable:$true] %s371_s25  ;;  %s374_s3 = int_to_ptr.vmem [resolvable:$true] %s373_s3 }
  0x30   : > { %5145 = dma.hbm_to_vmem [thread:$0]  (!%p5773_p5), %s341_s27, 9216, %s343_s9, [#allocation11], %s5639_s30, %s5639_s30, %s5640_s29  }
  0x31   : > { %5151 = dma.hbm_to_vmem [thread:$0]  (!%p5773_p5), %s372_s25, 1024, %s374_s3, [#allocation14], %s5639_s30, %s5639_s30, %s5640_s29  }
  0x32   : > { %s3639_s4 = sadd.s32 4294967294, %s5630_s23   ;;  %p59_p7 = scmp.ne.s32.totalorder %s5610_s18, %s5606_s17 }
  0x33   : > { %p60_p8 = scmp.eq.s32.totalorder %s5630_s23, 0  ;;  %s6144_s28 = smov (%p41_p6, %s40_s28), 0 }
  0x34   : > { %6114 = sst [smem:[#allocation26_spill]] %s6144_s28  ;;  %s6146_s10 = smov (!%p41_p6, %s43_s10), %s5626_s22 }
  0x35   : > { %s48_s27 = ssub.s32 %s5622_s21, %s6144_s28  ;;  %p5816_p9 = por %p60_p8, %p59_p7 }
  0x36   : > { %p45_p10 = scmp.ge.s32.totalorder %s6146_s10, 2  ;;  %p65_p11 = scmp.ne.s32.totalorder %s5606_s17, %s5602_s16 }
  0x37   : > { %p285_p12 = scmp.eq.s32.totalorder %s5757_s24, 7  ;;  %p291_p13 = scmp.eq.s32.totalorder %s3639_s4, 7 }
  0x38   : > { %s6148_s10 = smov (%p45_p10, %s6146_s10), 0  ;;  %p5827_p0 = por %p66_p1, %p65_p11 }
  0x39   : > { %6116 = sst [smem:[#allocation27_spill]] %s6148_s10  ;;  %p5831_p2 = por %p285_p12, %p59_p7 }
  0x3a   : > { %s47_s7 = ssub.s32 %s5626_s22, %s6148_s10  ;;  %p5837_p4 = por %p291_p13, %p65_p11 }
  0x3b   : > { %s49_s19 = sor.u32 %s48_s27, %s47_s7  ;;  %p76_p5 = scmp.eq.s32.totalorder %s47_s7, 0 }
  0x3c   : > { %p50_p6 = scmp.eq.s32.totalorder %s49_s19, 0  ;;  %p5168_p10 = scmp.lt.s32.totalorder %s5630_s23, 8 }
  0x3d   : > { %s390_s20 = sand.u32 1, %s5610_s18   ;;  %s3648_s25 = sshll.u32 %s5622_s21, 1 }
  0x3e   : > { %s5845_s1 = scalar_select %p50_p6, %s5610_s18, %s52_s12  }
  0x3f   : > { %s3647_s3 = sshll.u32 %s390_s20, 4  ;;  %s3649_s4 = sshll.u32 %s5626_s22, 3 }
  0x40   : > { %s399_s26 = sadd.s32 %s3649_s4, %s3648_s25  ;;  %s394_s2 = scalar_lea.vmem [#allocation4], %s3647_s3 }
  0x41   : > { %s404_s27 = sshll.u32 %s394_s2, 4  ;;  %s3650_s19 = sshll.u32 %s399_s26, 3  ;;  %s405_s27 = int_to_ptr.vmem [resolvable:$true] %s404_s27 }
  0x42   : > { %s401_s12 = scalar_lea.hbm %s6075_s0, %s3650_s19  ;;  %p5153_p7 = pnand %p5168_p10, %p5816_p9 }
  0x43   : > { %s402_s8 = sshll.u32 %s401_s12, 4  ;;  %s391_s10 = scalar_lea.sflag [#allocation5], %s390_s20  ;;  %s403_s8 = int_to_ptr.hbm [resolvable:$true] %s402_s8 }
  0x44   : > { %s6120_s28 = smov 8   ;;  %s6121_s25 = smov 128  }
  0x45   : > { %5155 = dma.hbm_to_vmem [thread:$0]  (!%p5153_p7), %s403_s8, 256, %s405_s27, %s391_s10, %s6121_s25, %s6121_s25, %s6120_s28  }
  0x46   : > { %s78_s3 = sadd.s32 1, %s5598_s15  ;;  %p85_p11 = scmp.ne.s32.totalorder %s5598_s15, %s5594_s14 }
  0x47   : > { %s5861_s2 = scalar_select %p76_p5, %s5598_s15, %s78_s3  }
  0x48   : > { %p91_p12 = scmp.ne.s32.totalorder %s5594_s14, %s5590_s13  ;;  %s414_s5 = sand.u32 1, %s5630_s23  }
  0x49   : > { %s416_s6 = sand.u32 1, %s5598_s15   ;;  %p87_p13 = por %p85_p11, %p60_p8 }
  0x4a   : > { %p5873_p9 = por %p91_p12, %p66_p1  ;;  %s3651_s11 = sshll.u32 %s416_s6, 4 }
  0x4b   : > { %s4821_s20 = sshll.u32 %s5626_s22, 4  ;;  %s6123_s10 = sld [smem:[#allocation28_spill]] }
  0x4c   : > { %s418_s27 = scalar_lea.vmem [#allocation7], %s3651_s11  ;;  %p5156_p5 = pnand %p5168_p10, %p87_p13 }
  0x4d   : > { %s426_s19 = sshll.u32 %s418_s27, 4  ;;  %s415_s13 = scalar_lea.sflag [#allocation8], %s414_s5  ;;  %s427_s19 = int_to_ptr.vmem [resolvable:$true] %s426_s19 }
  0x4e   : > { %s5889_s6 = sand.u32 (!%p5765_p3), 1, %s5606_s17  }
  0x4f   : > { %438 = sbr.rel (%p5765_p3) target bundleno = 1034 (0x40a), region = 60  ;;  %s3655_s11 = sshll.u32 (!%p5765_p3), %s5889_s6, 4 }
  0x50   : > { %s5895_s4 = scalar_lea.vmem (!%p5765_p3), [#allocation4], %s3655_s11 }
  0x51   : > { %s423_s7 = scalar_lea.hbm %s6123_s10, %s4821_s20  ;;  %s441_s20 = scalar_lea.sflag (!%p5765_p3), [#allocation5], %s5889_s6 }
  0x52   : > { %s424_s12 = sshll.u32 %s423_s7, 4  ;;  %s425_s12 = int_to_ptr.hbm [resolvable:$true] %s424_s12 }
  0x53   : > { %5158 = dma.hbm_to_vmem [thread:$0]  (!%p5156_p5), %s425_s12, 256, %s427_s19, %s415_s13, %s6121_s25, %s6121_s25, %s6120_s28  }
  0x54   : > { %5565 = dma.done.wait (%p5827_p0), %s441_s20, 256  }
  0x55   : > { %5567 = vsyncadd (%p5827_p0), %s441_s20, 4294967040  ;;  %s450_s28 = sand.u32 1, %s5757_s24   ;;  %s452_s25 = sand.u32 1, %s5594_s14  }
  0x56   : > { %s5903_s5 = sshll.u32 %s452_s25, 4  ;;  %s451_s8 = scalar_lea.sflag [#allocation8], %s450_s28 }
  0x57   : > { %s454_s10 = scalar_lea.vmem [#allocation7], %s5903_s5 }
  0x58   : > { %5569 = dma.done.wait (%p5873_p9), %s451_s8, 256  }
  0x59   : > { %5571 = vsyncadd (%p5873_p9), %s451_s8, 4294967040 }
  0x5a   : > { %5573 = dma.done.wait (%p66_p1), [#allocation8], 4096  }
  0x5b   : > { %5575 = vsyncadd (%p66_p1), [#allocation8], 4294963200 }
  0x5c   : > { %5577 = dma.done.wait (%p66_p1), [#allocation11], 30720  }
  0x5d   : > { %5579 = vsyncadd (%p66_p1), [#allocation11], 4294936576 }
  0x5e   : > { %5581 = dma.done.wait (%p66_p1), [#allocation14], 2048  }
  0x5f   : > { %5583 = vsyncadd (%p66_p1), [#allocation14], 4294965248  ;;  %v3721_v0 = vld [vmem:[#allocation9 + $0x70] sm:$0xf]  ;;  %v4837_v1 = vld [vmem:[#allocation9 + $0x74] sm:$0xf0] }
  0x60   : > { %v3785_v2 = vld [vmem:[#allocation9 + $0xf0] sm:$0xf]  ;;  %v3722_v3 = vor.u32 %v4837_v1, %v3721_v0  ;;  %v4853_v4 = vld [vmem:[#allocation9 + $0xf4] sm:$0xf0]  ;;  %v3713_v5 = vld [vmem:[#allocation9 + $0x60] sm:$0xf] }
  0x61   : > { %v4835_v6 = vld [vmem:[#allocation9 + $0x64] sm:$0xf0]  ;;  %v3786_v7 = vor.u32 %v4853_v4, %v3785_v2  ;;  %v3777_v8 = vld [vmem:[#allocation9 + $0xe0] sm:$0xf]  ;;  %v3705_v12 = vld [vmem:[#allocation9 + $0x50] sm:$0xf] }
  0x62   : > { %v4851_v9 = vld [vmem:[#allocation9 + $0xe4] sm:$0xf0]  ;;  %734 = vmatpush.bf16.msra.mxu0 %v3722_v3  ;;  %v3714_v10 = vor.u32 %v4835_v6, %v3713_v5  ;;  %v4833_v13 = vld [vmem:[#allocation9 + $0x54] sm:$0xf0]  ;;  %v3769_v14 = vld [vmem:[#allocation9 + $0xd0] sm:$0xf] }
  0x63   : > { %748 = vmatpush.bf16.msra.mxu1 %v3786_v7  ;;  %v3778_v11 = vor.u32 %v4851_v9, %v3777_v8  ;;  %v4849_v15 = vld [vmem:[#allocation9 + $0xd4] sm:$0xf0]  ;;  %v3706_v16 = vor.u32 %v4833_v13, %v3705_v12  ;;  %v3697_v18 = vld [vmem:[#allocation9 + $0x40] sm:$0xf]  ;;  %v4831_v19 = vld [vmem:[#allocation9 + $0x44] sm:$0xf0] }
  0x64   : > { %v3770_v17 = vor.u32 %v4849_v15, %v3769_v14  ;;  %v3761_v20 = vld [vmem:[#allocation9 + $0xc0] sm:$0xf]  ;;  %v4847_v21 = vld [vmem:[#allocation9 + $0xc4] sm:$0xf0]  ;;  %v3689_v22 = vld [vmem:[#allocation9 + $0x30] sm:$0xf]  ;;  %v3698_v23 = vor.u32 %v4831_v19, %v3697_v18 }
  0x65   : > { %v4829_v24 = vld [vmem:[#allocation9 + $0x34] sm:$0xf0]  ;;  %v3753_v25 = vld [vmem:[#allocation9 + $0xb0] sm:$0xf]  ;;  %v3762_v27 = vor.u32 %v4847_v21, %v3761_v20  ;;  %v4836_v28 = vld [vmem:[#allocation9 + $0x74] sm:$0xf] }
  0x66   : > { %735 = vmatpush.bf16.msra.mxu0 %v3714_v10  ;;  %v4845_v26 = vld [vmem:[#allocation9 + $0xb4] sm:$0xf0]  ;;  %v3723_v29 = vld [vmem:[#allocation9 + $0x78] sm:$0xf0]  ;;  %v4852_v30 = vld [vmem:[#allocation9 + $0xf4] sm:$0xf]  ;;  %v3690_v38 = vor.u32 %v4829_v24, %v3689_v22 }
  0x67   : > { %749 = vmatpush.bf16.msra.mxu1 %v3778_v11  ;;  %v3726_v31 = vor.u32 %v4836_v28, %v3723_v29  ;;  %v3787_v32 = vld [vmem:[#allocation9 + $0xf8] sm:$0xf0]  ;;  %v4834_v33 = vld [vmem:[#allocation9 + $0x64] sm:$0xf]  ;;  %v3715_v34 = vld [vmem:[#allocation9 + $0x68] sm:$0xf0]  ;;  %v3754_v42 = vor.u32 %v4845_v26, %v3753_v25 }
  0x68   : > { %v3790_v35 = vor.u32 %v4852_v30, %v3787_v32  ;;  %v4850_v36 = vld [vmem:[#allocation9 + $0xe4] sm:$0xf]  ;;  %v3779_v37 = vld [vmem:[#allocation9 + $0xe8] sm:$0xf0]  ;;  %v3681_v39 = vld [vmem:[#allocation9 + $0x20] sm:$0xf]  ;;  %v3718_v41 = vor.u32 %v4834_v33, %v3715_v34 }
  0x69   : > { %v4827_v40 = vld [vmem:[#allocation9 + $0x24] sm:$0xf0]  ;;  %762 = vmatpush.bf16.msra.mxu2 %v3726_v31  ;;  %v3745_v43 = vld [vmem:[#allocation9 + $0xa0] sm:$0xf]  ;;  %v3782_v44 = vor.u32 %v4850_v36, %v3779_v37  ;;  %v4832_v45 = vld [vmem:[#allocation9 + $0x54] sm:$0xf] }
  0x6a   : > { %736 = vmatpush.bf16.msra.mxu0 %v3706_v16  ;;  %776 = vmatpush.bf16.msra.mxu3 %v3790_v35  ;;  %v3707_v46 = vld [vmem:[#allocation9 + $0x58] sm:$0xf0]  ;;  %v4843_v47 = vld [vmem:[#allocation9 + $0xa4] sm:$0xf0]  ;;  %v4848_v48 = vld [vmem:[#allocation9 + $0xd4] sm:$0xf]  ;;  %v3682_v52 = vor.u32 %v4827_v40, %v3681_v39 }
  0x6b   : > { %750 = vmatpush.bf16.msra.mxu1 %v3770_v17  ;;  %v3771_v49 = vld [vmem:[#allocation9 + $0xd8] sm:$0xf0]  ;;  %v3673_v50 = vld [vmem:[#allocation9 + $0x10] sm:$0xf]  ;;  %v4825_v51 = vld [vmem:[#allocation9 + $0x14] sm:$0xf0]  ;;  %v3710_v57 = vor.u32 %v4832_v45, %v3707_v46  ;;  %v3746_v58 = vor.u32 %v4843_v47, %v3745_v43 }
  0x6c   : > { %v3737_v53 = vld [vmem:[#allocation9 + $0x90] sm:$0xf]  ;;  %v527_v55 = vld [vmem:[%s454_s10 + $0x8] sm:$0xff]  ;;  %v3774_v60 = vor.u32 %v4848_v48, %v3771_v49  ;;  %v4830_v61 = vld [vmem:[#allocation9 + $0x44] sm:$0xf]  ;;  %v3674_v2 = vor.u32 %v4825_v51, %v3673_v50  ;;  %s6125_s26 = sld [smem:[#allocation30_spill]] }
  0x6d   : > { %v526_v54 = vld [vmem:[%s454_s10] sm:$0xff]  ;;  %763 = vmatpush.bf16.msra.mxu2 %v3718_v41  ;;  %v523_v59 = vld [vmem:[%s5895_s4 + $0x8] sm:$0xff]  ;;  %v529_v4 = vpack.c.bf16 %v527_v55, %v527_v55  ;;  %vm2429_vm7 = vcmask 1042432   ;;  %vm2583_vm8 = vsmask.f32 4352  ;;  %s6126_s7 = sld [smem:[#allocation23_spill]] }
  0x6e   : > { %737 = vmatpush.bf16.msra.mxu0 %v3698_v23  ;;  %v522_v56 = vld [vmem:[%s5895_s4] sm:$0xff]  ;;  %777 = vmatpush.bf16.msra.mxu3 %v3782_v44  ;;  %v3699_v62 = vld [vmem:[#allocation9 + $0x48] sm:$0xf0]  ;;  %v4841_v63 = vld [vmem:[#allocation9 + $0x94] sm:$0xf0]  ;;  %v528_v3 = vpack.c.bf16 %v526_v54, %v526_v54  ;;  %v525_v9 = vpack.c.bf16 %v523_v59, %v523_v59  ;;  %s6127_s27 = sld [smem:[#allocation24_spill]] }
  0x6f   : > { %751 = vmatpush.bf16.msra.mxu1 %v3762_v27  ;;  %v4846_v0 = vld [vmem:[#allocation9 + $0xc4] sm:$0xf]  ;;  %v3763_v1 = vld [vmem:[#allocation9 + $0xc8] sm:$0xf0]  ;;  %v3665_v5 = vld [vmem:[#allocation9] sm:$0xf]  ;;  %v524_v8 = vpack.c.bf16 %v522_v56, %v522_v56  ;;  %v3702_v10 = vor.u32 %v4830_v61, %v3699_v62  ;;  %v3738_v11 = vor.u32 %v4841_v63, %v3737_v53  ;;  %v533_v20 = vunpack.c.l.b16 %v529_v4 }
  0x70   : > { %v4823_v6 = vld [vmem:[#allocation9 + $0x4] sm:$0xf0]  ;;  %v3729_v7 = vld [vmem:[#allocation9 + $0x80] sm:$0xf]  ;;  %v3766_v13 = vor.u32 %v4846_v0, %v3763_v1  ;;  %v4828_v14 = vld [vmem:[#allocation9 + $0x34] sm:$0xf]  ;;  %v532_v19 = vunpack.c.l.b16 %v528_v3  ;;  %v539_v26 = vunpack.c.l.b16 %v525_v9 }
  0x71   : > { %764 = vmatpush.bf16.msra.mxu2 %v3710_v57  ;;  %v4839_v12 = vld [vmem:[#allocation9 + $0x84] sm:$0xf0]  ;;  %v3691_v15 = vld [vmem:[#allocation9 + $0x38] sm:$0xf0]  ;;  %v4844_v16 = vld [vmem:[#allocation9 + $0xb4] sm:$0xf]  ;;  %v3666_v24 = vor.u32 %v4823_v6, %v3665_v5  ;;  %v538_v25 = vunpack.c.l.b16 %v524_v8 }
  0x72   : > { %738 = vmatpush.bf16.msra.mxu0 %v3690_v38  ;;  %778 = vmatpush.bf16.msra.mxu3 %v3774_v60  ;;  %v3755_v17 = vld [vmem:[#allocation9 + $0xb8] sm:$0xf0]  ;;  %v3877_v18 = vld [vmem:[#allocation10 + $0xa8] sm:$0xf]  ;;  %v4876_v21 = vld [vmem:[#allocation10 + $0xb0] sm:$0xf0]  ;;  %v3694_v27 = vor.u32 %v4828_v14, %v3691_v15  ;;  %v3730_v28 = vor.u32 %v4839_v12, %v3729_v7  ;;  %v5928_v37 = vpack.c.b16 %v533_v20, %v532_v19 }
  0x73   : > { %752 = vmatpush.bf16.msra.mxu1 %v3754_v42  ;;  %v3973_v22 = vld [vmem:[#allocation10 + $0x168] sm:$0xf]  ;;  %v4900_v23 = vld [vmem:[#allocation10 + $0x170] sm:$0xf0]  ;;  %v3758_v29 = vor.u32 %v4844_v16, %v3755_v17  ;;  %v4826_v30 = vld [vmem:[#allocation9 + $0x24] sm:$0xf]  ;;  %v3878_v34 = vor.u32 %v4876_v21, %v3877_v18  ;;  %v5930_v41 = vpack.c.b16 %v539_v26, %v538_v25 }
  0x74   : > { %v3683_v31 = vld [vmem:[#allocation9 + $0x28] sm:$0xf0]  ;;  %v4842_v32 = vld [vmem:[#allocation9 + $0xa4] sm:$0xf]  ;;  %v3974_v35 = vor.u32 %v4900_v23, %v3973_v22  ;;  %v3865_v36 = vld [vmem:[#allocation10 + $0x90] sm:$0xf] }
  0x75   : > { %765 = vmatpush.bf16.msra.mxu2 %v3702_v10  ;;  %v3747_v33 = vld [vmem:[#allocation9 + $0xa8] sm:$0xf0]  ;;  %v4873_v38 = vld [vmem:[#allocation10 + $0x98] sm:$0xf0]  ;;  %v3961_v39 = vld [vmem:[#allocation10 + $0x150] sm:$0xf]  ;;  %v3686_v42 = vor.u32 %v4826_v30, %v3683_v31 }
  0x76   : > { %739 = vmatpush.bf16.msra.mxu0 %v3682_v52  ;;  %779 = vmatpush.bf16.msra.mxu3 %v3766_v13  ;;  %v4897_v40 = vld [vmem:[#allocation10 + $0x158] sm:$0xf0]  ;;  %v3750_v43 = vor.u32 %v4842_v32, %v3747_v33  ;;  %v4824_v44 = vld [vmem:[#allocation9 + $0x14] sm:$0xf]  ;;  %v3866_v48 = vor.u32 %v4873_v38, %v3865_v36  ;;  %v3853_v50 = vld [vmem:[#allocation10 + $0x78] sm:$0xf] }
  0x77   : > { %753 = vmatpush.bf16.msra.mxu1 %v3746_v58  ;;  %v3675_v45 = vld [vmem:[#allocation9 + $0x18] sm:$0xf0]  ;;  %v4840_v46 = vld [vmem:[#allocation9 + $0x94] sm:$0xf]  ;;  %v3962_v49 = vor.u32 %v4897_v40, %v3961_v39  ;;  %v4870_v51 = vld [vmem:[#allocation10 + $0x80] sm:$0xf0] }
  0x78   : > { %v3739_v47 = vld [vmem:[#allocation9 + $0x98] sm:$0xf0]  ;;  %v3949_v52 = vld [vmem:[#allocation10 + $0x138] sm:$0xf]  ;;  %v4894_v53 = vld [vmem:[#allocation10 + $0x140] sm:$0xf0]  ;;  %v3678_v54 = vor.u32 %v4824_v44, %v3675_v45  ;;  %v3854_v63 = vor.u32 %v4870_v51, %v3853_v50 }
  0x79   : > { %766 = vmatpush.bf16.msra.mxu2 %v3694_v27  ;;  %v4822_v55 = vld [vmem:[#allocation9 + $0x4] sm:$0xf]  ;;  %v3742_v56 = vor.u32 %v4840_v46, %v3739_v47  ;;  %v3667_v57 = vld [vmem:[#allocation9 + $0x8] sm:$0xf0]  ;;  %v4069_v60 = vld [vmem:[#allocation10 + $0x228] sm:$0xf]  ;;  %v3950_v0 = vor.u32 %v4894_v53, %v3949_v52 }
  0x7a   : > { %740 = vmatpush.bf16.msra.mxu0 %v3674_v2  ;;  %780 = vmatpush.bf16.msra.mxu3 %v3758_v29  ;;  %v4838_v58 = vld [vmem:[#allocation9 + $0x84] sm:$0xf]  ;;  %v3731_v59 = vld [vmem:[#allocation9 + $0x88] sm:$0xf0]  ;;  %v4924_v61 = vld [vmem:[#allocation10 + $0x230] sm:$0xf0]  ;;  %v3670_v4 = vor.u32 %v4822_v55, %v3667_v57 }
  0x7b   : > { %754 = vmatpush.bf16.msra.mxu1 %v3738_v11  ;;  %v4165_v62 = vld [vmem:[#allocation10 + $0x2e8] sm:$0xf]  ;;  %v4948_v1 = vld [vmem:[#allocation10 + $0x2f0] sm:$0xf0]  ;;  %v3841_v2 = vld [vmem:[#allocation10 + $0x60] sm:$0xf]  ;;  %v3734_v7 = vor.u32 %v4838_v58, %v3731_v59  ;;  %v4070_v8 = vor.u32 %v4924_v61, %v4069_v60 }
  0x7c   : > { %v4867_v3 = vld [vmem:[#allocation10 + $0x68] sm:$0xf0]  ;;  %v3937_v5 = vld [vmem:[#allocation10 + $0x120] sm:$0xf]  ;;  %v4057_v9 = vld [vmem:[#allocation10 + $0x210] sm:$0xf]  ;;  %v4166_v12 = vor.u32 %v4948_v1, %v4165_v62 }
  0x7d   : > { %767 = vmatpush.bf16.msra.mxu2 %v3686_v42  ;;  %v4891_v6 = vld [vmem:[#allocation10 + $0x128] sm:$0xf0]  ;;  %v4921_v10 = vld [vmem:[#allocation10 + $0x218] sm:$0xf0]  ;;  %v4153_v11 = vld [vmem:[#allocation10 + $0x2d0] sm:$0xf]  ;;  %v3842_v14 = vor.u32 %v4867_v3, %v3841_v2 }
  0x7e   : > { %741 = vmatpush.bf16.msra.mxu0 %v3666_v24  ;;  %781 = vmatpush.bf16.msra.mxu3 %v3750_v43  ;;  %v4945_v13 = vld [vmem:[#allocation10 + $0x2d8] sm:$0xf0]  ;;  %v3938_v15 = vor.u32 %v4891_v6, %v3937_v5  ;;  %v3829_v16 = vld [vmem:[#allocation10 + $0x48] sm:$0xf]  ;;  %v4864_v17 = vld [vmem:[#allocation10 + $0x50] sm:$0xf0]  ;;  %v4058_v20 = vor.u32 %v4921_v10, %v4057_v9 }
  0x7f   : > { %755 = vmatpush.bf16.msra.mxu1 %v3730_v28  ;;  %v3925_v18 = vld [vmem:[#allocation10 + $0x108] sm:$0xf]  ;;  %v4888_v19 = vld [vmem:[#allocation10 + $0x110] sm:$0xf0]  ;;  %v4154_v21 = vor.u32 %v4945_v13, %v4153_v11  ;;  %v4045_v22 = vld [vmem:[#allocation10 + $0x1f8] sm:$0xf]  ;;  %v3830_v25 = vor.u32 %v4864_v17, %v3829_v16 }
  0x80   : > { %v4918_v23 = vld [vmem:[#allocation10 + $0x200] sm:$0xf0]  ;;  %v4141_v24 = vld [vmem:[#allocation10 + $0x2b8] sm:$0xf]  ;;  %v3926_v27 = vor.u32 %v4888_v19, %v3925_v18  ;;  %v3817_v28 = vld [vmem:[#allocation10 + $0x30] sm:$0xf] }
  0x81   : > { %742 = vmatmul.bf16.vlgmr.msra.gmra.mxu0 %v5928_v37  ;;  %768 = vmatpush.bf16.msra.mxu2 %v3678_v54  ;;  %v4942_v26 = vld [vmem:[#allocation10 + $0x2c0] sm:$0xf0]  ;;  %v4861_v29 = vld [vmem:[#allocation10 + $0x38] sm:$0xf0]  ;;  %v3913_v30 = vld [vmem:[#allocation10 + $0xf0] sm:$0xf]  ;;  %v4046_v32 = vor.u32 %v4918_v23, %v4045_v22 }
  0x82   : > { %1992 = vmatpush.bf16.msrb.mxu0 %v3878_v34  ;;  %756 = vmatmul.bf16.vlgmr.msra.gmra.mxu1 %v5930_v41  ;;  %v4885_v31 = vld [vmem:[#allocation10 + $0xf8] sm:$0xf0]  ;;  %v4142_v33 = vor.u32 %v4942_v26, %v4141_v24  ;;  %v4033_v34 = vld [vmem:[#allocation10 + $0x1e0] sm:$0xf]  ;;  %v3818_v38 = vor.u32 %v4861_v29, %v3817_v28  ;;  %v4939_v39 = vld [vmem:[#allocation10 + $0x2a8] sm:$0xf0] }
  0x83   : > { %2006 = vmatpush.bf16.msrb.mxu1 %v3974_v35  ;;  %782 = vmatpush.bf16.msra.mxu3 %v3742_v56  ;;  %v4915_v35 = vld [vmem:[#allocation10 + $0x1e8] sm:$0xf0]  ;;  %v4129_v36 = vld [vmem:[#allocation10 + $0x2a0] sm:$0xf]  ;;  %v3914_v40 = vor.u32 %v4885_v31, %v3913_v30  ;;  %v3805_v42 = vld [vmem:[#allocation10 + $0x18] sm:$0xf] }
  0x84   : > { %v4858_v43 = vld [vmem:[#allocation10 + $0x20] sm:$0xf0]  ;;  %v3901_v44 = vld [vmem:[#allocation10 + $0xd8] sm:$0xf]  ;;  %v4034_v45 = vor.u32 %v4915_v35, %v4033_v34  ;;  %v4021_v46 = vld [vmem:[#allocation10 + $0x1c8] sm:$0xf] }
  0x85   : > { %769 = vmatpush.bf16.msra.mxu2 %v3670_v4  ;;  %v4912_v47 = vld [vmem:[#allocation10 + $0x1d0] sm:$0xf0]  ;;  %v4009_v54 = vld [vmem:[#allocation10 + $0x1b0] sm:$0xf]  ;;  %v4909_v55 = vld [vmem:[#allocation10 + $0x1b8] sm:$0xf0] }
  0x86   : > { %1993 = vmatpush.bf16.msrb.mxu0 %v3866_v48  ;;  %v3806_v48 = vor.u32 %v4858_v43, %v3805_v42  ;;  %v4936_v50 = vld [vmem:[#allocation10 + $0x290] sm:$0xf0]  ;;  %v4022_v52 = vor.u32 %v4912_v47, %v4021_v46  ;;  %v4105_v56 = vld [vmem:[#allocation10 + $0x270] sm:$0xf]  ;;  %v4933_v57 = vld [vmem:[#allocation10 + $0x278] sm:$0xf0]  ;;  %v4010_v58 = vor.u32 %v4909_v55, %v4009_v54 }
  0x87   : > { %2007 = vmatpush.bf16.msrb.mxu1 %v3962_v49  ;;  %783 = vmatpush.bf16.msra.mxu3 %v3734_v7  ;;  %v4117_v49 = vld [vmem:[#allocation10 + $0x288] sm:$0xf]  ;;  %v4106_v59 = vor.u32 %v4933_v57, %v4105_v56  ;;  %v3997_v60 = vld [vmem:[#allocation10 + $0x198] sm:$0xf]  ;;  %v4906_v61 = vld [vmem:[#allocation10 + $0x1a0] sm:$0xf0] }
  0x88   : > { %770 = vmatmul.bf16.vlgmr.msra.gmra.mxu2 %v5928_v37  ;;  %v4882_v37 = vld [vmem:[#allocation10 + $0xe0] sm:$0xf0]  ;;  %v4118_v53 = vor.u32 %v4936_v50, %v4117_v49  ;;  %v4093_v62 = vld [vmem:[#allocation10 + $0x258] sm:$0xf]  ;;  %v4081_v2 = vld [vmem:[#allocation10 + $0x240] sm:$0xf] }
  0x89   : > { %2020 = vmatpush.bf16.msrb.mxu2 %v4070_v8  ;;  %v3902_v51 = vor.u32 %v4882_v37, %v3901_v44  ;;  %v4927_v3 = vld [vmem:[#allocation10 + $0x248] sm:$0xf0]  ;;  %v3879_v6 = vld [vmem:[#allocation10 + $0xb4] sm:$0xf0]  ;;  %v4872_v8 = vld [vmem:[#allocation10 + $0x94] sm:$0xf] }
  0x8a   : > { %1994 = vmatpush.bf16.msrb.mxu0 %v3854_v63  ;;  %784 = vmatmul.bf16.vlgmr.msra.gmra.mxu3 %v5930_v41  ;;  %v4130_v41 = vor.u32 %v4939_v39, %v4129_v36  ;;  %v4930_v63 = vld [vmem:[#allocation10 + $0x260] sm:$0xf0]  ;;  %v4082_v4 = vor.u32 %v4927_v3, %v4081_v2  ;;  %v4875_v5 = vld [vmem:[#allocation10 + $0xac] sm:$0xf]  ;;  %v3867_v9 = vld [vmem:[#allocation10 + $0x9c] sm:$0xf0] }
  0x8b   : > { %2008 = vmatpush.bf16.msrb.mxu1 %v3950_v0  ;;  %2034 = vmatpush.bf16.msrb.mxu3 %v4166_v12  ;;  %v3998_v0 = vor.u32 %v4906_v61, %v3997_v60  ;;  %v4094_v1 = vor.u32 %v4930_v63, %v4093_v62  ;;  %v3882_v7 = vor.u32 %v4875_v5, %v3879_v6  ;;  %v3793_v11 = vld [vmem:[#allocation10] sm:$0xf]  ;;  %v4855_v12 = vld [vmem:[#allocation10 + $0x8] sm:$0xf0]  ;;  %v4357_v22 = vld [vmem:[#allocation10 + $0x468] sm:$0xf] }
  0x8c   : > { %v3870_v10 = vor.u32 %v4872_v8, %v3867_v9  ;;  %v3889_v13 = vld [vmem:[#allocation10 + $0xc0] sm:$0xf]  ;;  %v4903_v17 = vld [vmem:[#allocation10 + $0x188] sm:$0xf0]  ;;  %v4996_v24 = vld [vmem:[#allocation10 + $0x470] sm:$0xf0] }
  0x8d   : > { %2021 = vmatpush.bf16.msrb.mxu2 %v4058_v20  ;;  %v3985_v16 = vld [vmem:[#allocation10 + $0x180] sm:$0xf]  ;;  %v4261_v20 = vld [vmem:[#allocation10 + $0x3a8] sm:$0xf]  ;;  %v5020_v26 = vld [vmem:[#allocation10 + $0x530] sm:$0xf0] }
  0x8e   : > { %1995 = vmatpush.bf16.msrb.mxu0 %v3842_v14  ;;  %v3794_v14 = vor.u32 %v4855_v12, %v3793_v11  ;;  %v3986_v19 = vor.u32 %v4903_v17, %v3985_v16  ;;  %v4869_v29 = vld [vmem:[#allocation10 + $0x7c] sm:$0xf]  ;;  %v3855_v30 = vld [vmem:[#allocation10 + $0x84] sm:$0xf0]  ;;  %v4249_v31 = vld [vmem:[#allocation10 + $0x390] sm:$0xf] }
  0x8f   : > { %2009 = vmatpush.bf16.msrb.mxu1 %v3938_v15  ;;  %2035 = vmatpush.bf16.msrb.mxu3 %v4154_v21  ;;  %v4879_v15 = vld [vmem:[#allocation10 + $0xc8] sm:$0xf0]  ;;  %v4972_v21 = vld [vmem:[#allocation10 + $0x3b0] sm:$0xf0]  ;;  %v3858_v34 = vor.u32 %v4869_v29, %v3855_v30  ;;  %v4993_v36 = vld [vmem:[#allocation10 + $0x458] sm:$0xf0] }
  0x90   : > { %v3890_v18 = vor.u32 %v4879_v15, %v3889_v13  ;;  %v4262_v23 = vor.u32 %v4972_v21, %v4261_v20  ;;  %v5017_v39 = vld [vmem:[#allocation10 + $0x518] sm:$0xf0]  ;;  %v4866_v43 = vld [vmem:[#allocation10 + $0x64] sm:$0xf]  ;;  %v3843_v44 = vld [vmem:[#allocation10 + $0x6c] sm:$0xf0] }
  0x91   : > { %2022 = vmatpush.bf16.msrb.mxu2 %v4046_v32  ;;  %v4969_v32 = vld [vmem:[#allocation10 + $0x398] sm:$0xf0]  ;;  %v3846_v37 = vor.u32 %v4866_v43, %v3843_v44  ;;  %v4333_v46 = vld [vmem:[#allocation10 + $0x438] sm:$0xf]  ;;  %v5014_v50 = vld [vmem:[#allocation10 + $0x500] sm:$0xf0] }
  0x92   : > { %1996 = vmatpush.bf16.msrb.mxu0 %v3830_v25  ;;  %v4453_v25 = vld [vmem:[#allocation10 + $0x528] sm:$0xf]  ;;  %v4250_v35 = vor.u32 %v4969_v32, %v4249_v31  ;;  %v4429_v49 = vld [vmem:[#allocation10 + $0x4f8] sm:$0xf]  ;;  %v5643_v56 = vmov 0.0   ;;  %s6128_s13 = sld [smem:[#allocation34_spill]] }
  0x93   : > { %2010 = vmatpush.bf16.msrb.mxu1 %v3926_v27  ;;  %2036 = vmatpush.bf16.msrb.mxu3 %v4142_v33  ;;  %v4358_v27 = vor.u32 %v4996_v24, %v4357_v22  ;;  %v4454_v28 = vor.u32 %v5020_v26, %v4453_v25  ;;  %v4345_v33 = vld [vmem:[#allocation10 + $0x450] sm:$0xf]  ;;  %v3831_v54 = vld [vmem:[#allocation10 + $0x54] sm:$0xf0]  ;;  %802 = vst [vmem:[#allocation2 + $0x4] sm:$0xf] %v5643_v56 }
  0x94   : > { %v4225_v57 = vld [vmem:[#allocation10 + $0x360] sm:$0xf]  ;;  %v4987_v61 = vld [vmem:[#allocation10 + $0x428] sm:$0xf0]  ;;  %v4860_v2 = vld [vmem:[#allocation10 + $0x34] sm:$0xf] }
  0x95   : > { %2023 = vmatpush.bf16.msrb.mxu2 %v4034_v45  ;;  %v4237_v45 = vld [vmem:[#allocation10 + $0x378] sm:$0xf]  ;;  %v4417_v62 = vld [vmem:[#allocation10 + $0x4e0] sm:$0xf]  ;;  %v5011_v63 = vld [vmem:[#allocation10 + $0x4e8] sm:$0xf0] }
  0x96   : > { %1997 = vmatpush.bf16.msrb.mxu0 %v3818_v38  ;;  %v4441_v38 = vld [vmem:[#allocation10 + $0x510] sm:$0xf]  ;;  %v3819_v3 = vld [vmem:[#allocation10 + $0x3c] sm:$0xf0]  ;;  %803 = vst [vmem:[#allocation2 + $0x18] sm:$0xf] %v5643_v56 }
  0x97   : > { %2011 = vmatpush.bf16.msrb.mxu1 %v3914_v40  ;;  %2037 = vmatpush.bf16.msrb.mxu3 %v4130_v41  ;;  %v4346_v40 = vor.u32 %v4993_v36, %v4345_v33  ;;  %v4442_v42 = vor.u32 %v5017_v39, %v4441_v38  ;;  %v4966_v41 = vld [vmem:[#allocation10 + $0x380] sm:$0xf0]  ;;  %v4213_v5 = vld [vmem:[#allocation10 + $0x348] sm:$0xf]  ;;  %v4960_v6 = vld [vmem:[#allocation10 + $0x350] sm:$0xf0] }
  0x98   : > { %v4238_v47 = vor.u32 %v4966_v41, %v4237_v45  ;;  %v4214_v8 = vor.u32 %v4960_v6, %v4213_v5  ;;  %v4984_v9 = vld [vmem:[#allocation10 + $0x410] sm:$0xf0]  ;;  %v4957_v15 = vld [vmem:[#allocation10 + $0x338] sm:$0xf0]  ;;  %v4297_v16 = vld [vmem:[#allocation10 + $0x3f0] sm:$0xf] }
  0x99   : > { %2024 = vmatpush.bf16.msrb.mxu2 %v4022_v52  ;;  %v4430_v52 = vor.u32 %v5014_v50, %v4429_v49  ;;  %v5008_v11 = vld [vmem:[#allocation10 + $0x4d0] sm:$0xf0]  ;;  %v4981_v17 = vld [vmem:[#allocation10 + $0x3f8] sm:$0xf0]  ;;  %v4189_v21 = vld [vmem:[#allocation10 + $0x318] sm:$0xf] }
  0x9a   : > { %1998 = vmatpush.bf16.msrb.mxu0 %v3806_v48  ;;  %v4990_v48 = vld [vmem:[#allocation10 + $0x440] sm:$0xf0]  ;;  %v4285_v25 = vld [vmem:[#allocation10 + $0x3d8] sm:$0xf]  ;;  %v4857_v29 = vld [vmem:[#allocation10 + $0x1c] sm:$0xf] }
  0x9b   : > { %2012 = vmatpush.bf16.msrb.mxu1 %v3902_v51  ;;  %2038 = vmatpush.bf16.msrb.mxu3 %v4118_v53  ;;  %v4334_v51 = vor.u32 %v4990_v48, %v4333_v46  ;;  %v4863_v53 = vld [vmem:[#allocation10 + $0x4c] sm:$0xf]  ;;  %v4954_v22 = vld [vmem:[#allocation10 + $0x320] sm:$0xf0]  ;;  %v3807_v30 = vld [vmem:[#allocation10 + $0x24] sm:$0xf0] }
  0x9c   : > { %v3834_v55 = vor.u32 %v4863_v53, %v3831_v54  ;;  %v4978_v26 = vld [vmem:[#allocation10 + $0x3e0] sm:$0xf0]  ;;  %v3810_v31 = vor.u32 %v4857_v29, %v3807_v30  ;;  %v4190_v32 = vor.u32 %v4954_v22, %v4189_v21  ;;  %v4177_v33 = vld [vmem:[#allocation10 + $0x300] sm:$0xf]  ;;  %v4951_v38 = vld [vmem:[#allocation10 + $0x308] sm:$0xf0] }
  0x9d   : > { %2025 = vmatpush.bf16.msrb.mxu2 %v4010_v58  ;;  %v4963_v58 = vld [vmem:[#allocation10 + $0x368] sm:$0xf0]  ;;  %v4273_v39 = vld [vmem:[#allocation10 + $0x3c0] sm:$0xf]  ;;  %v4178_v45 = vor.u32 %v4951_v38, %v4177_v33  ;;  %v3975_v21 = vld [vmem:[#allocation10 + $0x174] sm:$0xf0] }
  0x9e   : > { %1999 = vmatpush.bf16.msrb.mxu0 %v3794_v14  ;;  %v4226_v60 = vor.u32 %v4963_v58, %v4225_v57  ;;  %v4201_v14 = vld [vmem:[#allocation10 + $0x330] sm:$0xf]  ;;  %v4369_v43 = vld [vmem:[#allocation10 + $0x480] sm:$0xf]  ;;  %v4999_v44 = vld [vmem:[#allocation10 + $0x488] sm:$0xf0] }
  0x9f   : > { %2039 = vmatpush.bf16.msrb.mxu3 %v4106_v59  ;;  %2013 = vmatpush.bf16.msrb.mxu1 %v3890_v18  ;;  %v4321_v59 = vld [vmem:[#allocation10 + $0x420] sm:$0xf]  ;;  %v4393_v18 = vld [vmem:[#allocation10 + $0x4b0] sm:$0xf]  ;;  %v4202_v20 = vor.u32 %v4957_v15, %v4201_v14  ;;  %v4370_v46 = vor.u32 %v4999_v44, %v4369_v43  ;;  %v4923_v22 = vld [vmem:[#allocation10 + $0x22c] sm:$0xf] }
  0xa0   : > { %v5277_v49 = vld [vmem:[%s6125_s26] ss:$0 sm:$0xff]  ;;  %v4239_v33 = vld [vmem:[#allocation10 + $0x384] sm:$0xf0]  ;;  %v4920_v44 = vld [vmem:[#allocation10 + $0x214] sm:$0xf] }
  0xa1   : > { %2026 = vmatpush.bf16.msrb.mxu2 %v3998_v0  ;;  %v4322_v0 = vor.u32 %v4987_v61, %v4321_v59  ;;  %v3963_v43 = vld [vmem:[#allocation10 + $0x15c] sm:$0xf0]  ;;  %s4816_s3 = sshll.u32 %s6126_s7, 1  ;;  %s4817_s20 = sshll.u32 %s6127_s27, 3 }
  0xa2   : > { %2048 = vmatpush.bf16.msra.mxu0 %v4262_v23  ;;  %v4298_v23 = vor.u32 %v4981_v17, %v4297_v16  ;;  %s6129_s25 = sld [smem:[#allocation36_spill]]  ;;  %s3472_s5 = sadd.s32 %s4817_s20, %s4816_s3 }
  0xa3   : > { %2040 = vmatpush.bf16.msrb.mxu3 %v4094_v1  ;;  %2062 = vmatpush.bf16.msra.mxu1 %v4358_v27  ;;  %v4418_v1 = vor.u32 %v5011_v63, %v4417_v62  ;;  %v4381_v27 = vld [vmem:[#allocation10 + $0x498] sm:$0xf]  ;;  %s4818_s8 = sshll.u32 %s3472_s5, 3  ;;  %s521_s10 = scalar_lea.vmem [#allocation16], %s3655_s11 }
  0xa4   : > { %s6130_s26 = sld [smem:[#allocation37_spill]]  ;;  %s3475_s12 = sshll.u32 %s521_s10, 4  ;;  %s3476_s12 = int_to_ptr.vmem [resolvable:$true] %s3475_s12 }
  0xa5   : > { %2027 = vmatpush.bf16.msrb.mxu2 %v3986_v19  ;;  %v5005_v19 = vld [vmem:[#allocation10 + $0x4b8] sm:$0xf0]  ;;  %s3461_s27 = scalar_lea.sflag [#allocation6], %s5889_s6 }
  0xa6   : > { %2049 = vmatpush.bf16.msra.mxu0 %v4250_v35  ;;  %v4394_v24 = vor.u32 %v5005_v19, %v4393_v18  ;;  %v4286_v35 = vor.u32 %v4978_v26, %v4285_v25  ;;  %v4947_v26 = vld [vmem:[#allocation10 + $0x2ec] sm:$0xf] }
  0xa7   : > { %2041 = vmatpush.bf16.msrb.mxu3 %v4082_v4  ;;  %2063 = vmatpush.bf16.msra.mxu1 %v4346_v40  ;;  %v3822_v4 = vor.u32 %v4860_v2, %v3819_v3  ;;  %v3795_v40 = vld [vmem:[#allocation10 + $0xc] sm:$0xf0] }
  0xa9   : > { %2076 = vmatpush.bf16.msra.mxu2 %v4454_v28  ;;  %v5002_v28 = vld [vmem:[#allocation10 + $0x4a0] sm:$0xf0] }
  0xaa   : > { %2050 = vmatpush.bf16.msra.mxu0 %v4238_v47  ;;  %v4382_v36 = vor.u32 %v5002_v28, %v4381_v27  ;;  %v2304_v47 = vlaneseq  ;;  %v4167_v27 = vld [vmem:[#allocation10 + $0x2f4] sm:$0xf0]  ;;  %s3474_s19 = scalar_lea.hbm %s6130_s26, %s4818_s8  ;;  %s5512_s4 = scalar_lea.hbm %s6130_s26, 128 }
  0xab   : > { %2090 = vmatpush.bf16.msra.mxu3 %v3882_v7  ;;  %2064 = vmatpush.bf16.msra.mxu1 %v4334_v51  ;;  %v4309_v7 = vld [vmem:[#allocation10 + $0x408] sm:$0xf]  ;;  %s3477_s7 = sshll.u32 %s3474_s19, 4  ;;  %s3478_s7 = int_to_ptr.hbm [resolvable:$true] %s3477_s7 }
  0xac   : > { %v4310_v12 = vor.u32 %v4984_v9, %v4309_v7  ;;  %vm2306_vm0 = vcmp.lt.s32.totalorder %v2304_v47, 384  ;;  %v4251_v9 = vld [vmem:[#allocation10 + $0x39c] sm:$0xf0]  ;;  %v4893_v47 = vld [vmem:[#allocation10 + $0x13c] sm:$0xf] }
  0xad   : > { %2077 = vmatpush.bf16.msra.mxu2 %v4442_v42  ;;  %v4975_v42 = vld [vmem:[#allocation10 + $0x3c8] sm:$0xf0]  ;;  %2309 = vst.msk [vmem:[#allocation3 + $0x7] ss:$8 sm:$0x7] %vm2306_vm0, %v5643_v56 }
  0xae   : > { %2051 = vmatpush.bf16.msra.mxu0 %v4226_v60  ;;  %v4274_v41 = vor.u32 %v4975_v42, %v4273_v39  ;;  %2312 = vst.msk [vmem:[#allocation3 + $0x48] ss:$8 sm:$0x7] %vm2306_vm0, %v5643_v56  ;;  %v4896_v42 = vld [vmem:[#allocation10 + $0x154] sm:$0xf] }
  0xaf   : > { %2091 = vmatpush.bf16.msra.mxu3 %v3870_v10  ;;  %2065 = vmatpush.bf16.msra.mxu1 %v4322_v0  ;;  %v4405_v10 = vld [vmem:[#allocation10 + $0x4c8] sm:$0xf]  ;;  %v4971_v0 = vld [vmem:[#allocation10 + $0x3ac] sm:$0xf] }
  0xb0   : > { %v4406_v13 = vor.u32 %v5008_v11, %v4405_v10 }
  0xb1   : > { %2078 = vmatpush.bf16.msra.mxu2 %v4430_v52 }
  0xb2   : > { %2052 = vmatpush.bf16.msra.mxu0 %v4214_v8  ;;  %v4968_v8 = vld [vmem:[#allocation10 + $0x394] sm:$0xf] }
  0xb3   : > { %2092 = vmatpush.bf16.msra.mxu3 %v3858_v34  ;;  %2066 = vmatpush.bf16.msra.mxu1 %v4310_v12  ;;  %v4854_v34 = vld [vmem:[#allocation10 + $0x4] sm:$0xf]  ;;  %v4254_v17 = vor.u32 %v4968_v8, %v4251_v9 }
  0xb4   : > { %v4914_v8 = vld [vmem:[#allocation10 + $0x1e4] sm:$0xf] }
  0xb5   : > { %2079 = vmatpush.bf16.msra.mxu2 %v4418_v1  ;;  %v4263_v1 = vld [vmem:[#allocation10 + $0x3b4] sm:$0xf0] }
  0xb6   : > { %2053 = vmatpush.bf16.msra.mxu0 %v4202_v20  ;;  %v4266_v6 = vor.u32 %v4971_v0, %v4263_v1  ;;  %v4959_v1 = vld [vmem:[#allocation10 + $0x34c] sm:$0xf] }
  0xb7   : > { %2093 = vmatpush.bf16.msra.mxu3 %v3846_v37  ;;  %2067 = vmatpush.bf16.msra.mxu1 %v4298_v23  ;;  %v3798_v37 = vor.u32 %v4854_v34, %v3795_v40  ;;  %v4071_v23 = vld [vmem:[#allocation10 + $0x234] sm:$0xf0]  ;;  %v4170_v40 = vor.u32 %v4947_v26, %v4167_v27 }
  0xb9   : > { %2080 = vmatpush.bf16.msra.mxu2 %v4406_v13  ;;  %v4899_v13 = vld [vmem:[#allocation10 + $0x16c] sm:$0xf] }
  0xba   : > { %2054 = vmatpush.bf16.msra.mxu0 %v4190_v32  ;;  %v4965_v32 = vld [vmem:[#allocation10 + $0x37c] sm:$0xf]  ;;  %v3978_v34 = vor.u32 %v4899_v13, %v3975_v21 }
  0xbb   : > { %2094 = vmatpush.bf16.msra.mxu3 %v3834_v55  ;;  %2068 = vmatpush.bf16.msra.mxu1 %v4286_v35  ;;  %v4074_v35 = vor.u32 %v4923_v22, %v4071_v23  ;;  %v4887_v23 = vld [vmem:[#allocation10 + $0x10c] sm:$0xf] }
  0xbd   : > { %2081 = vmatpush.bf16.msra.mxu2 %v4394_v24 }
  0xbe   : > { %2055 = vmatpush.bf16.msra.mxu0 %v4178_v45  ;;  %v4944_v45 = vld [vmem:[#allocation10 + $0x2d4] sm:$0xf] }
  0xbf   : > { %2095 = vmatpush.bf16.msra.mxu3 %v3822_v4  ;;  %2069 = vmatpush.bf16.msra.mxu1 %v4274_v41  ;;  %v4155_v41 = vld [vmem:[#allocation10 + $0x2dc] sm:$0xf0] }
  0xc1   : > { %2082 = vmatpush.bf16.msra.mxu2 %v4382_v36 }
  0xc3   : > { %2096 = vmatpush.bf16.msra.mxu3 %v3810_v31 }
  0xc5   : > { %2083 = vmatpush.bf16.msra.mxu2 %v4370_v46  ;;  %v4242_v46 = vor.u32 %v4965_v32, %v4239_v33  ;;  %v4935_v33 = vld [vmem:[#allocation10 + $0x28c] sm:$0xf] }
  0xc7   : > { %2097 = vmatpush.bf16.msra.mxu3 %v3798_v37  ;;  %v4059_v37 = vld [vmem:[#allocation10 + $0x21c] sm:$0xf0] }
  0xfe   : > { %v743_v48 = vpop.f32.mrf.mxu0 }
  0xff   : > { %v757_v50 = vpop.f32.mrf.mxu1 }
 0x100   : > { %v758_v51 = vadd.f32 %v757_v50, %v743_v48  ;;  %v4962_v48 = vld [vmem:[#allocation10 + $0x364] sm:$0xf]  ;;  %v3966_v50 = vor.u32 %v4896_v42, %v3963_v43  ;;  %v4191_v42 = vld [vmem:[#allocation10 + $0x324] sm:$0xf0] }
 0x102   : > { %v794_v52 = vadd.f32 %v5277_v49, %v758_v51  ;;  %v3951_v51 = vld [vmem:[#allocation10 + $0x144] sm:$0xf0] }
 0x104   : > { %vm796_vm1 = vcmp.gt.f32.partialorder %v794_v52, 0.0  ;;  %v798_v53 = vmul.f32 0.1, %v794_v52 }
 0x106   : > { %v800_v54 = vsel %vm796_vm1, %v794_v52, %v798_v53  ;;  %v745_v55 = vpop.f32.mrf.mxu0  ;;  %v4917_v52 = vld [vmem:[#allocation10 + $0x1fc] sm:$0xf]  ;;  %v4047_v53 = vld [vmem:[#allocation10 + $0x204] sm:$0xf0] }
 0x107   : > { %804 = vst [vmem:[#allocation2 + $0x8] sm:$0xff] %v800_v54  ;;  %v759_v57 = vpop.f32.mrf.mxu1  ;;  %v820_v61 = vpack.c.bf16 %v800_v54, %v800_v54  ;;  %v4062_v54 = vor.u32 %v4920_v44, %v4059_v37 }
 0x108   : > { %v760_v58 = vadd.f32 %v759_v57, %v745_v55  ;;  %v4158_v55 = vor.u32 %v4944_v45, %v4155_v41  ;;  %v4941_v57 = vld [vmem:[#allocation10 + $0x2bc] sm:$0xf] }
 0x109   : > { %v852_v56 = vunpack.c.l.b16 %v820_v61 }
 0x10a   : > { %v795_v59 = vadd.f32 %v5277_v49, %v760_v58  ;;  %v4227_v49 = vld [vmem:[#allocation10 + $0x36c] sm:$0xf0]  ;;  %v4143_v58 = vld [vmem:[#allocation10 + $0x2c4] sm:$0xf0] }
 0x10c   : > { %vm797_vm2 = vcmp.gt.f32.partialorder %v795_v59, 0.0  ;;  %v799_v60 = vmul.f32 0.1, %v795_v59 }
 0x10e   : > { %v801_v62 = vsel %vm797_vm2, %v795_v59, %v799_v60  ;;  %v806_v2 = vld [vmem:[#allocation2 + $0x4] sm:$0xff]  ;;  %v4230_v60 = vor.u32 %v4962_v48, %v4227_v49  ;;  %v4908_v48 = vld [vmem:[#allocation10 + $0x1b4] sm:$0xf] }
 0x10f   : > { %805 = vst [vmem:[#allocation2 + $0x10] sm:$0xff] %v801_v62  ;;  %v821_v63 = vpack.c.bf16 %v801_v62, %v801_v62  ;;  %v810_v3 = vld [vmem:[#allocation2 + $0x6] sm:$0xff]  ;;  %v808_v10 = vpack.c.bf16 %v806_v2, %v806_v2  ;;  %v4215_v2 = vld [vmem:[#allocation10 + $0x354] sm:$0xf0] }
 0x110   : > { %v814_v5 = vld [vmem:[#allocation2 + $0x7] sm:$0xff]  ;;  %v812_v11 = vpack.c.bf16 %v810_v3, %v810_v3  ;;  %v3954_v3 = vor.u32 %v4893_v47, %v3951_v51  ;;  %v3915_v47 = vld [vmem:[#allocation10 + $0xfc] sm:$0xf0]  ;;  %v4932_v51 = vld [vmem:[#allocation10 + $0x274] sm:$0xf] }
 0x111   : > { %v853_v4 = vunpack.c.l.b16 %v821_v63  ;;  %v816_v12 = vpack.c.bf16 %v814_v5, %v814_v5  ;;  %v834_v24 = vunpack.c.l.b16 %v808_v10  ;;  %v4890_v5 = vld [vmem:[#allocation10 + $0x124] sm:$0xf]  ;;  %v4035_v10 = vld [vmem:[#allocation10 + $0x1ec] sm:$0xf0] }
 0x112   : > { %v840_v25 = vunpack.c.l.b16 %v812_v11  ;;  %v4938_v11 = vld [vmem:[#allocation10 + $0x2a4] sm:$0xf]  ;;  %v4038_v21 = vor.u32 %v4914_v8, %v4035_v10 }
 0x113   : > { %v5943_v7 = vpack.c.b16 %v853_v4, %v852_v56  ;;  %v846_v30 = vunpack.c.l.b16 %v816_v12  ;;  %v4050_v56 = vor.u32 %v4917_v52, %v4047_v53  ;;  %v4146_v4 = vor.u32 %v4941_v57, %v4143_v58  ;;  %v4131_v12 = vld [vmem:[#allocation10 + $0x2ac] sm:$0xf0]  ;;  %v4107_v52 = vld [vmem:[#allocation10 + $0x27c] sm:$0xf0]  ;;  %v4898_v8 = vld [vmem:[#allocation10 + $0x160] sm:$0xf0] }
 0x114   : > { %v4134_v22 = vor.u32 %v4938_v11, %v4131_v12  ;;  %v3981_v58 = vld [vmem:[#allocation10 + $0x170] sm:$0xf]  ;;  %v4902_v12 = vld [vmem:[#allocation10 + $0x184] sm:$0xf] }
 0x115   : > { %2042 = vmatmul.bf16.vlgmr.msrb.gmra.mxu3 %v5943_v7  ;;  %v3891_v11 = vld [vmem:[#allocation10 + $0xcc] sm:$0xf0] }
 0x116   : > { %v807_v14 = vld [vmem:[#allocation2 + $0xc] sm:$0xff]  ;;  %2146 = vmatpush.bf16.msrb.mxu3 %v4266_v6  ;;  %v830_v0 = vld [vmem:[#allocation2 + $0x14] sm:$0xff] }
 0x117   : > { %v811_v15 = vld [vmem:[#allocation2 + $0xe] sm:$0xff]  ;;  %v809_v18 = vpack.c.bf16 %v807_v14, %v807_v14 }
 0x118   : > { %v815_v16 = vld [vmem:[#allocation2 + $0xf] sm:$0xff]  ;;  %v813_v19 = vpack.c.bf16 %v811_v15, %v811_v15 }
 0x119   : > { %v817_v20 = vpack.c.bf16 %v815_v16, %v815_v16  ;;  %v5946_v28 = vunpack.c.l.b16 %v809_v18  ;;  %v822_v59 = vld [vmem:[#allocation2 + $0x9] sm:$0xff]  ;;  %v823_v61 = vld [vmem:[#allocation2 + $0x11] sm:$0xff]  ;;  %v831_v16 = vpack.c.bf16 %v830_v0, %v830_v0 }
 0x11a   : > { %v841_v29 = vunpack.c.l.b16 %v813_v19  ;;  %2147 = vmatpush.bf16.msrb.mxu3 %v4254_v17  ;;  %v826_v62 = vld [vmem:[#allocation2 + $0xa] sm:$0xff]  ;;  %v827_v63 = vld [vmem:[#allocation2 + $0x12] sm:$0xff]  ;;  %v824_v9 = vpack.c.bf16 %v822_v59, %v822_v59  ;;  %v825_v13 = vpack.c.bf16 %v823_v61, %v823_v61  ;;  %v4218_v17 = vor.u32 %v4959_v1, %v4215_v2  ;;  %v4203_v19 = vld [vmem:[#allocation10 + $0x33c] sm:$0xf0] }
 0x11b   : > { %v847_v31 = vunpack.c.l.b16 %v817_v20  ;;  %v5949_v36 = vpack.c.b16 %v5946_v28, %v834_v24  ;;  %v3939_v6 = vld [vmem:[#allocation10 + $0x12c] sm:$0xf0]  ;;  %v828_v14 = vpack.c.bf16 %v826_v62, %v826_v62  ;;  %v829_v15 = vpack.c.bf16 %v827_v63, %v827_v63  ;;  %v4956_v18 = vld [vmem:[#allocation10 + $0x334] sm:$0xf]  ;;  %v4901_v59 = vld [vmem:[#allocation10 + $0x178] sm:$0xf0] }
 0x11c   : > { %v5951_v38 = vpack.c.b16 %v841_v29, %v840_v25  ;;  %v3942_v20 = vor.u32 %v4890_v5, %v3939_v6  ;;  %v858_v24 = vunpack.c.l.b16 %v824_v9  ;;  %v859_v25 = vunpack.c.l.b16 %v825_v13  ;;  %v3927_v29 = vld [vmem:[#allocation10 + $0x114] sm:$0xf0]  ;;  %v4881_v61 = vld [vmem:[#allocation10 + $0xdc] sm:$0xf]  ;;  %v3903_v62 = vld [vmem:[#allocation10 + $0xe4] sm:$0xf0] }
 0x11d   : > { %v5953_v39 = vpack.c.b16 %v847_v31, %v846_v30  ;;  %2000 = vmatmul.bf16.vlgmr.msrb.gmra.mxu0 %v5949_v36  ;;  %v864_v26 = vunpack.c.l.b16 %v828_v14  ;;  %v865_v27 = vunpack.c.l.b16 %v829_v15  ;;  %v4911_v30 = vld [vmem:[#allocation10 + $0x1cc] sm:$0xf]  ;;  %v4023_v31 = vld [vmem:[#allocation10 + $0x1d4] sm:$0xf0]  ;;  %v869_v32 = vunpack.c.l.b16 %v831_v16  ;;  %v4905_v63 = vld [vmem:[#allocation10 + $0x19c] sm:$0xf] }
 0x11e   : > { %2014 = vmatmul.bf16.vlgmr.msrb.gmra.mxu1 %v5951_v38  ;;  %2104 = vmatpush.bf16.msrb.mxu0 %v3978_v34  ;;  %v4119_v34 = vld [vmem:[#allocation10 + $0x294] sm:$0xf0]  ;;  %v3930_v43 = vor.u32 %v4887_v23, %v3927_v29  ;;  %v4026_v44 = vor.u32 %v4911_v30, %v4023_v31  ;;  %v5959_v37 = vpack.c.b16 %v859_v25, %v858_v24  ;;  %v3999_v0 = vld [vmem:[#allocation10 + $0x1a4] sm:$0xf0]  ;;  %v4929_v1 = vld [vmem:[#allocation10 + $0x25c] sm:$0xf] }
 0x11f   : > { %2028 = vmatmul.bf16.vlgmr.msrb.gmra.mxu2 %v5953_v39  ;;  %2118 = vmatpush.bf16.msrb.mxu1 %v4074_v35  ;;  %v4206_v35 = vor.u32 %v4956_v18, %v4203_v19  ;;  %v5961_v45 = vpack.c.b16 %v865_v27, %v864_v26  ;;  %v4122_v41 = vor.u32 %v4935_v33, %v4119_v34  ;;  %v4095_v2 = vld [vmem:[#allocation10 + $0x264] sm:$0xf0]  ;;  %v4878_v5 = vld [vmem:[#allocation10 + $0xc4] sm:$0xf]  ;;  %v3969_v6 = vld [vmem:[#allocation10 + $0x158] sm:$0xf] }
 0x120   : > { %2132 = vmatpush.bf16.msrb.mxu2 %v4170_v40  ;;  %2148 = vmatpush.bf16.msrb.mxu3 %v4242_v46  ;;  %v4953_v40 = vld [vmem:[#allocation10 + $0x31c] sm:$0xf]  ;;  %v4884_v46 = vld [vmem:[#allocation10 + $0xf4] sm:$0xf]  ;;  %v5964_v49 = vpack.c.b16 %v869_v32, %v5946_v28  ;;  %v4002_v9 = vor.u32 %v4905_v63, %v3999_v0  ;;  %v4098_v10 = vor.u32 %v4929_v1, %v4095_v2  ;;  %v3987_v13 = vld [vmem:[#allocation10 + $0x18c] sm:$0xf0] }
 0x121   : > { %v4194_v53 = vor.u32 %v4953_v40, %v4191_v42  ;;  %v3918_v57 = vor.u32 %v4884_v46, %v3915_v47  ;;  %v4926_v14 = vld [vmem:[#allocation10 + $0x244] sm:$0xf]  ;;  %v4083_v15 = vld [vmem:[#allocation10 + $0x24c] sm:$0xf0]  ;;  %v4995_v16 = vld [vmem:[#allocation10 + $0x46c] sm:$0xf]  ;;  %v3990_v24 = vor.u32 %v4902_v12, %v3987_v13 }
 0x122   : > { %2105 = vmatpush.bf16.msrb.mxu0 %v3966_v50  ;;  %v4011_v50 = vld [vmem:[#allocation10 + $0x1bc] sm:$0xf0]  ;;  %v5019_v18 = vld [vmem:[#allocation10 + $0x52c] sm:$0xf]  ;;  %v4455_v19 = vld [vmem:[#allocation10 + $0x534] sm:$0xf0]  ;;  %v4086_v25 = vor.u32 %v4926_v14, %v4083_v15 }
 0x123   : > { %2119 = vmatpush.bf16.msrb.mxu1 %v4062_v54  ;;  %v4950_v54 = vld [vmem:[#allocation10 + $0x304] sm:$0xf]  ;;  %v4014_v28 = vor.u32 %v4908_v48, %v4011_v50  ;;  %v4877_v23 = vld [vmem:[#allocation10 + $0xb8] sm:$0xf0]  ;;  %v4458_v27 = vor.u32 %v5019_v18, %v4455_v19  ;;  %v4992_v29 = vld [vmem:[#allocation10 + $0x454] sm:$0xf] }
 0x124   : > { %2133 = vmatpush.bf16.msrb.mxu2 %v4158_v55  ;;  %2149 = vmatpush.bf16.msrb.mxu3 %v4230_v60  ;;  %v4179_v55 = vld [vmem:[#allocation10 + $0x30c] sm:$0xf0]  ;;  %v4110_v60 = vor.u32 %v4932_v51, %v4107_v52  ;;  %v3957_v30 = vld [vmem:[#allocation10 + $0x140] sm:$0xf]  ;;  %v4895_v31 = vld [vmem:[#allocation10 + $0x148] sm:$0xf0] }
 0x125   : > { %2098 = vmatmul.bf16.vlgmr.msra.gmra.mxu3 %v5949_v36  ;;  %v4347_v33 = vld [vmem:[#allocation10 + $0x45c] sm:$0xf0]  ;;  %v5016_v34 = vld [vmem:[#allocation10 + $0x514] sm:$0xf]  ;;  %v3873_v40 = vld [vmem:[#allocation10 + $0x98] sm:$0xf] }
 0x126   : > { %2106 = vmatpush.bf16.msrb.mxu0 %v3954_v3  ;;  %v4182_v3 = vor.u32 %v4950_v54, %v4179_v55  ;;  %v4874_v42 = vld [vmem:[#allocation10 + $0xa0] sm:$0xf0]  ;;  %v4989_v46 = vld [vmem:[#allocation10 + $0x43c] sm:$0xf]  ;;  %v3945_v47 = vld [vmem:[#allocation10 + $0x128] sm:$0xf] }
 0x127   : > { %2120 = vmatpush.bf16.msrb.mxu1 %v4050_v56  ;;  %v3982_v56 = vor.u32 %v4901_v59, %v3981_v58  ;;  %v4892_v48 = vld [vmem:[#allocation10 + $0x130] sm:$0xf0]  ;;  %v3874_v50 = vor.u32 %v4874_v42, %v3873_v40  ;;  %v4335_v51 = vld [vmem:[#allocation10 + $0x444] sm:$0xf0]  ;;  %v5013_v52 = vld [vmem:[#allocation10 + $0x4fc] sm:$0xf] }
 0x128   : > { %2134 = vmatpush.bf16.msrb.mxu2 %v4146_v4  ;;  %2150 = vmatpush.bf16.msrb.mxu3 %v4218_v17  ;;  %v3906_v4 = vor.u32 %v4881_v61, %v3903_v62  ;;  %v4359_v17 = vld [vmem:[#allocation10 + $0x474] sm:$0xf0]  ;;  %v3861_v54 = vld [vmem:[#allocation10 + $0x80] sm:$0xf]  ;;  %v4871_v55 = vld [vmem:[#allocation10 + $0x88] sm:$0xf0]  ;;  %v4338_v58 = vor.u32 %v4989_v46, %v4335_v51 }
 0x129   : > { %v4362_v26 = vor.u32 %v4995_v16, %v4359_v17  ;;  %v4889_v61 = vld [vmem:[#allocation10 + $0x118] sm:$0xf0]  ;;  %v3862_v62 = vor.u32 %v4871_v55, %v3861_v54  ;;  %v4323_v63 = vld [vmem:[#allocation10 + $0x42c] sm:$0xf0]  ;;  %v5010_v0 = vld [vmem:[#allocation10 + $0x4e4] sm:$0xf] }
 0x12a   : > { %2107 = vmatpush.bf16.msrb.mxu0 %v3942_v20  ;;  %v3970_v20 = vor.u32 %v4898_v8, %v3969_v6  ;;  %v4419_v1 = vld [vmem:[#allocation10 + $0x4ec] sm:$0xf0]  ;;  %v3849_v2 = vld [vmem:[#allocation10 + $0x68] sm:$0xf]  ;;  %v4983_v6 = vld [vmem:[#allocation10 + $0x40c] sm:$0xf] }
 0x12b   : > { %2121 = vmatpush.bf16.msrb.mxu1 %v4038_v21  ;;  %v3894_v21 = vor.u32 %v4878_v5, %v3891_v11  ;;  %v4422_v5 = vor.u32 %v5010_v0, %v4419_v1  ;;  %v3921_v8 = vld [vmem:[#allocation10 + $0xf8] sm:$0xf]  ;;  %v5007_v12 = vld [vmem:[#allocation10 + $0x4cc] sm:$0xf]  ;;  %v3837_v14 = vld [vmem:[#allocation10 + $0x50] sm:$0xf] }
 0x12c   : > { %2135 = vmatpush.bf16.msrb.mxu2 %v4134_v22  ;;  %2151 = vmatpush.bf16.msrb.mxu3 %v4206_v35  ;;  %v3885_v22 = vld [vmem:[#allocation10 + $0xb0] sm:$0xf]  ;;  %v4443_v35 = vld [vmem:[#allocation10 + $0x51c] sm:$0xf0]  ;;  %v4311_v11 = vld [vmem:[#allocation10 + $0x414] sm:$0xf0] }
 0x12d   : > { %2056 = vmatmul.bf16.vlgmr.msra.gmra.mxu0 %v5959_v37  ;;  %v3886_v32 = vor.u32 %v4877_v23, %v3885_v22  ;;  %v4407_v13 = vld [vmem:[#allocation10 + $0x4d4] sm:$0xf0]  ;;  %v4865_v15 = vld [vmem:[#allocation10 + $0x58] sm:$0xf0]  ;;  %v4314_v17 = vor.u32 %v4983_v6, %v4311_v11  ;;  %v4980_v19 = vld [vmem:[#allocation10 + $0x3f4] sm:$0xf] }
 0x12e   : > { %2070 = vmatmul.bf16.vlgmr.msra.gmra.mxu1 %v5961_v45  ;;  %2108 = vmatpush.bf16.msrb.mxu0 %v3930_v43  ;;  %v3958_v43 = vor.u32 %v4895_v31, %v3957_v30  ;;  %v4410_v18 = vor.u32 %v5007_v12, %v4407_v13  ;;  %v3838_v22 = vor.u32 %v4865_v15, %v3837_v14  ;;  %v4299_v23 = vld [vmem:[#allocation10 + $0x3fc] sm:$0xf0]  ;;  %v5001_v42 = vld [vmem:[#allocation10 + $0x49c] sm:$0xf]  ;;  %v4859_v46 = vld [vmem:[#allocation10 + $0x28] sm:$0xf0] }
 0x12f   : > { %2084 = vmatmul.bf16.vlgmr.msra.gmra.mxu2 %v5964_v49  ;;  %2122 = vmatpush.bf16.msrb.mxu1 %v4026_v44  ;;  %v4350_v44 = vor.u32 %v4992_v29, %v4347_v33  ;;  %v4977_v29 = vld [vmem:[#allocation10 + $0x3dc] sm:$0xf]  ;;  %v4302_v31 = vor.u32 %v4980_v19, %v4299_v23  ;;  %v4287_v33 = vld [vmem:[#allocation10 + $0x3e4] sm:$0xf0]  ;;  %v4998_v54 = vld [vmem:[#allocation10 + $0x484] sm:$0xf] }
 0x130   : > { %2136 = vmatpush.bf16.msrb.mxu2 %v4122_v41  ;;  %2152 = vmatpush.bf16.msrb.mxu3 %v4194_v53  ;;  %v4446_v41 = vor.u32 %v5016_v34, %v4443_v35  ;;  %v4431_v53 = vld [vmem:[#allocation10 + $0x504] sm:$0xf0]  ;;  %v4880_v35 = vld [vmem:[#allocation10 + $0xd0] sm:$0xf0]  ;;  %v4269_v0 = vld [vmem:[#allocation10 + $0x3b0] sm:$0xf] }
 0x131   : > { %v4434_v59 = vor.u32 %v5013_v52, %v4431_v53  ;;  %v3897_v34 = vld [vmem:[#allocation10 + $0xc8] sm:$0xf]  ;;  %v4974_v52 = vld [vmem:[#allocation10 + $0x3c4] sm:$0xf]  ;;  %v4275_v53 = vld [vmem:[#allocation10 + $0x3cc] sm:$0xf0] }
 0x132   : > { %2109 = vmatpush.bf16.msrb.mxu0 %v3918_v57  ;;  %v3946_v57 = vor.u32 %v4892_v48, %v3945_v47  ;;  %v4997_v47 = vld [vmem:[#allocation10 + $0x478] sm:$0xf0]  ;;  %v3898_v48 = vor.u32 %v4880_v35, %v3897_v34  ;;  %v4994_v6 = vld [vmem:[#allocation10 + $0x460] sm:$0xf0]  ;;  %v4161_v12 = vld [vmem:[#allocation10 + $0x2d8] sm:$0xf] }
 0x133   : > { %2123 = vmatpush.bf16.msrb.mxu1 %v4014_v28  ;;  %v4986_v28 = vld [vmem:[#allocation10 + $0x424] sm:$0xf]  ;;  %v4973_v1 = vld [vmem:[#allocation10 + $0x3b8] sm:$0xf0]  ;;  %v4257_v14 = vld [vmem:[#allocation10 + $0x398] sm:$0xf] }
 0x134   : > { %2137 = vmatpush.bf16.msrb.mxu2 %v4110_v60  ;;  %2153 = vmatpush.bf16.msrb.mxu3 %v4182_v3  ;;  %v3933_v60 = vld [vmem:[#allocation10 + $0x110] sm:$0xf]  ;;  %v4868_v3 = vld [vmem:[#allocation10 + $0x70] sm:$0xf0]  ;;  %v4922_v11 = vld [vmem:[#allocation10 + $0x220] sm:$0xf0] }
 0x135   : > { %v4946_v13 = vld [vmem:[#allocation10 + $0x2e0] sm:$0xf0]  ;;  %v4991_v19 = vld [vmem:[#allocation10 + $0x448] sm:$0xf0]  ;;  %v4149_v23 = vld [vmem:[#allocation10 + $0x2c0] sm:$0xf] }
 0x136   : > { %2110 = vmatpush.bf16.msrb.mxu0 %v3906_v4  ;;  %v4326_v4 = vor.u32 %v4986_v28, %v4323_v63  ;;  %v4949_v63 = vld [vmem:[#allocation10 + $0x2f8] sm:$0xf0]  ;;  %v4970_v15 = vld [vmem:[#allocation10 + $0x3a0] sm:$0xf0]  ;;  %v4041_v34 = vld [vmem:[#allocation10 + $0x1e8] sm:$0xf] }
 0x137   : > { %2124 = vmatpush.bf16.msrb.mxu1 %v4002_v9  ;;  %2154 = vmatmul.bf16.vlgmr.msrb.gmra.mxu3 %v5959_v37  ;;  %v4886_v9 = vld [vmem:[#allocation10 + $0x100] sm:$0xf0]  ;;  %v4916_v35 = vld [vmem:[#allocation10 + $0x1f0] sm:$0xf0] }
 0x138   : > { %2202 = vmatpush.bf16.msra.mxu3 %v3982_v56  ;;  %2138 = vmatpush.bf16.msrb.mxu2 %v4098_v10  ;;  %v3934_v56 = vor.u32 %v4889_v61, %v3933_v60  ;;  %v3850_v10 = vor.u32 %v4868_v3, %v3849_v2  ;;  %v3922_v16 = vor.u32 %v4886_v9, %v3921_v8  ;;  %v4077_v60 = vld [vmem:[#allocation10 + $0x230] sm:$0xf]  ;;  %v4925_v61 = vld [vmem:[#allocation10 + $0x238] sm:$0xf0] }
 0x139   : > { %v4278_v2 = vor.u32 %v4974_v52, %v4275_v53  ;;  %v4270_v9 = vor.u32 %v4973_v1, %v4269_v0  ;;  %v4913_v52 = vld [vmem:[#allocation10 + $0x1d8] sm:$0xf0]  ;;  %v4125_v53 = vld [vmem:[#allocation10 + $0x290] sm:$0xf]  ;;  %v4910_v0 = vld [vmem:[#allocation10 + $0x1c0] sm:$0xf0] }
 0x13a   : > { %2111 = vmatpush.bf16.msrb.mxu0 %v3894_v21  ;;  %v4883_v21 = vld [vmem:[#allocation10 + $0xe8] sm:$0xf0]  ;;  %v4113_v1 = vld [vmem:[#allocation10 + $0x278] sm:$0xf] }
 0x13b   : > { %2125 = vmatpush.bf16.msrb.mxu1 %v3990_v24  ;;  %v5004_v24 = vld [vmem:[#allocation10 + $0x4b4] sm:$0xf] }
 0x13c   : > { %2203 = vmatpush.bf16.msra.mxu3 %v3970_v20  ;;  %2139 = vmatpush.bf16.msrb.mxu2 %v4086_v25  ;;  %v3909_v20 = vld [vmem:[#allocation10 + $0xe0] sm:$0xf] }
 0x13d   : > { %2112 = vmatmul.bf16.vlgmr.msrb.gmra.mxu0 %v5951_v38  ;;  %v4395_v25 = vld [vmem:[#allocation10 + $0x4bc] sm:$0xf0]  ;;  %v3910_v30 = vor.u32 %v4883_v21, %v3909_v20  ;;  %v4162_v20 = vor.u32 %v4946_v13, %v4161_v12  ;;  %v4258_v21 = vor.u32 %v4970_v15, %v4257_v14  ;;  %v4907_v12 = vld [vmem:[#allocation10 + $0x1a8] sm:$0xf0] }
 0x13e   : > { %2160 = vmatpush.bf16.msra.mxu0 %v4362_v26  ;;  %2126 = vmatmul.bf16.vlgmr.msrb.gmra.mxu1 %v5953_v39  ;;  %v3825_v26 = vld [vmem:[#allocation10 + $0x38] sm:$0xf]  ;;  %v4101_v13 = vld [vmem:[#allocation10 + $0x260] sm:$0xf]  ;;  %v4931_v14 = vld [vmem:[#allocation10 + $0x268] sm:$0xf0] }
 0x13f   : > { %2174 = vmatpush.bf16.msra.mxu1 %v4458_v27  ;;  %2140 = vmatmul.bf16.vlgmr.msrb.gmra.mxu2 %v5943_v7  ;;  %v4862_v27 = vld [vmem:[#allocation10 + $0x40] sm:$0xf0]  ;;  %v4197_v15 = vld [vmem:[#allocation10 + $0x320] sm:$0xf] }
 0x140   : > { %2188 = vmatpush.bf16.msra.mxu2 %v3886_v32  ;;  %2204 = vmatpush.bf16.msra.mxu3 %v3958_v43  ;;  %v4398_v32 = vor.u32 %v5004_v24, %v4395_v25  ;;  %v3826_v40 = vor.u32 %v4862_v27, %v3825_v26  ;;  %v4383_v43 = vld [vmem:[#allocation10 + $0x4a4] sm:$0xf0]  ;;  %v4943_v24 = vld [vmem:[#allocation10 + $0x2c8] sm:$0xf0]  ;;  %v4245_v25 = vld [vmem:[#allocation10 + $0x380] sm:$0xf] }
 0x141   : > { %v4386_v51 = vor.u32 %v5001_v42, %v4383_v43  ;;  %v4967_v26 = vld [vmem:[#allocation10 + $0x388] sm:$0xf0]  ;;  %v4940_v42 = vld [vmem:[#allocation10 + $0x2b0] sm:$0xf0]  ;;  %v4233_v43 = vld [vmem:[#allocation10 + $0x368] sm:$0xf] }
 0x142   : > { %2161 = vmatpush.bf16.msra.mxu0 %v4350_v44  ;;  %v4365_v44 = vld [vmem:[#allocation10 + $0x470] sm:$0xf] }
 0x143   : > { %2175 = vmatpush.bf16.msra.mxu1 %v4446_v41  ;;  %v3813_v41 = vld [vmem:[#allocation10 + $0x20] sm:$0xf]  ;;  %v4366_v28 = vor.u32 %v4997_v47, %v4365_v44  ;;  %v4964_v44 = vld [vmem:[#allocation10 + $0x370] sm:$0xf0]  ;;  %v4985_v47 = vld [vmem:[#allocation10 + $0x418] sm:$0xf0] }
 0x144   : > { %2189 = vmatpush.bf16.msra.mxu2 %v3874_v50  ;;  %2205 = vmatpush.bf16.msra.mxu3 %v3946_v57  ;;  %v4290_v50 = vor.u32 %v4977_v29, %v4287_v33  ;;  %v3814_v55 = vor.u32 %v4859_v46, %v3813_v41  ;;  %v4371_v57 = vld [vmem:[#allocation10 + $0x48c] sm:$0xf0]  ;;  %v4246_v33 = vor.u32 %v4967_v26, %v4245_v25  ;;  %v4928_v25 = vld [vmem:[#allocation10 + $0x250] sm:$0xf0]  ;;  %v4185_v26 = vld [vmem:[#allocation10 + $0x308] sm:$0xf] }
 0x145   : > { %v4374_v3 = vor.u32 %v4998_v54, %v4371_v57  ;;  %v4317_v46 = vld [vmem:[#allocation10 + $0x410] sm:$0xf]  ;;  %v4937_v54 = vld [vmem:[#allocation10 + $0x298] sm:$0xf0] }
 0x146   : > { %2162 = vmatpush.bf16.msra.mxu0 %v4338_v58  ;;  %v3801_v58 = vld [vmem:[#allocation10 + $0x8] sm:$0xf]  ;;  %v4961_v57 = vld [vmem:[#allocation10 + $0x358] sm:$0xf0] }
 0x147   : > { %2176 = vmatpush.bf16.msra.mxu1 %v4434_v59  ;;  %v4856_v59 = vld [vmem:[#allocation10 + $0x10] sm:$0xf0] }
 0x148   : > { %2190 = vmatpush.bf16.msra.mxu2 %v3862_v62  ;;  %2206 = vmatpush.bf16.msra.mxu3 %v3934_v56  ;;  %v4173_v62 = vld [vmem:[#allocation10 + $0x2f0] sm:$0xf]  ;;  %v3802_v56 = vor.u32 %v4856_v59, %v3801_v58  ;;  %v4318_v58 = vor.u32 %v4985_v47, %v4317_v46 }
 0x149   : > { %v4174_v8 = vor.u32 %v4949_v63, %v4173_v62  ;;  %v4017_v63 = vld [vmem:[#allocation10 + $0x1b8] sm:$0xf] }
 0x14a   : > { %2163 = vmatpush.bf16.msra.mxu0 %v4326_v4  ;;  %v4078_v4 = vor.u32 %v4925_v61, %v4077_v60  ;;  %v4982_v60 = vld [vmem:[#allocation10 + $0x400] sm:$0xf0]  ;;  %v4126_v61 = vor.u32 %v4937_v54, %v4125_v53  ;;  %v4425_v53 = vld [vmem:[#allocation10 + $0x4e8] sm:$0xf]  ;;  %v5012_v54 = vld [vmem:[#allocation10 + $0x4f0] sm:$0xf0] }
 0x14b   : > { %2177 = vmatpush.bf16.msra.mxu1 %v4422_v5  ;;  %v4353_v5 = vld [vmem:[#allocation10 + $0x458] sm:$0xf] }
 0x14c   : > { %2191 = vmatpush.bf16.msra.mxu2 %v3850_v10  ;;  %2207 = vmatpush.bf16.msra.mxu3 %v3922_v16  ;;  %v4065_v10 = vld [vmem:[#allocation10 + $0x218] sm:$0xf]  ;;  %v4354_v16 = vor.u32 %v4994_v6, %v4353_v5  ;;  %v4018_v5 = vor.u32 %v4910_v0, %v4017_v63  ;;  %v4293_v6 = vld [vmem:[#allocation10 + $0x3e0] sm:$0xf] }
 0x14e   : > { %2164 = vmatpush.bf16.msra.mxu0 %v4314_v17  ;;  %v4066_v17 = vor.u32 %v4922_v11, %v4065_v10  ;;  %v4005_v11 = vld [vmem:[#allocation10 + $0x1a0] sm:$0xf] }
 0x14f   : > { %2178 = vmatpush.bf16.msra.mxu1 %v4410_v18  ;;  %v4341_v18 = vld [vmem:[#allocation10 + $0x440] sm:$0xf] }
 0x150   : > { %2192 = vmatpush.bf16.msra.mxu2 %v3838_v22  ;;  %2208 = vmatpush.bf16.msra.mxu3 %v3910_v30  ;;  %v4053_v22 = vld [vmem:[#allocation10 + $0x200] sm:$0xf]  ;;  %v4342_v27 = vor.u32 %v4991_v19, %v4341_v18  ;;  %v4329_v30 = vld [vmem:[#allocation10 + $0x428] sm:$0xf]  ;;  %v4006_v18 = vor.u32 %v4907_v12, %v4005_v11 }
 0x151   : > { %v4281_v19 = vld [vmem:[#allocation10 + $0x3c8] sm:$0xf] }
 0x152   : > { %2165 = vmatpush.bf16.msra.mxu0 %v4302_v31  ;;  %v4988_v31 = vld [vmem:[#allocation10 + $0x430] sm:$0xf0] }
 0x153   : > { %2179 = vmatpush.bf16.msra.mxu1 %v4398_v32  ;;  %v4150_v32 = vor.u32 %v4943_v24, %v4149_v23  ;;  %v4330_v41 = vor.u32 %v4988_v31, %v4329_v30  ;;  %v4904_v23 = vld [vmem:[#allocation10 + $0x190] sm:$0xf0]  ;;  %v4089_v24 = vld [vmem:[#allocation10 + $0x248] sm:$0xf]  ;;  %v785_v30 = vpop.f32.mrf.mxu3 }
 0x154   : > { %2193 = vmatpush.bf16.msra.mxu2 %v3826_v40  ;;  %2209 = vmatpush.bf16.msra.mxu3 %v3898_v48  ;;  %v4137_v40 = vld [vmem:[#allocation10 + $0x2a8] sm:$0xf] }
 0x155   : > { %v4138_v48 = vor.u32 %v4940_v42, %v4137_v40  ;;  %v4090_v40 = vor.u32 %v4928_v25, %v4089_v24 }
 0x156   : > { %2166 = vmatpush.bf16.msra.mxu0 %v4290_v50  ;;  %v4234_v50 = vor.u32 %v4964_v44, %v4233_v43  ;;  %v4449_v44 = vld [vmem:[#allocation10 + $0x518] sm:$0xf] }
 0x157   : > { %2180 = vmatpush.bf16.msra.mxu1 %v4386_v51  ;;  %2210 = vmatmul.bf16.vlgmr.msra.gmra.mxu3 %v5951_v38  ;;  %v4919_v38 = vld [vmem:[#allocation10 + $0x208] sm:$0xf0]  ;;  %v4029_v51 = vld [vmem:[#allocation10 + $0x1d0] sm:$0xf] }
 0x158   : > { %2194 = vmatpush.bf16.msra.mxu2 %v3814_v55  ;;  %2258 = vmatpush.bf16.msrb.mxu3 %v4366_v28  ;;  %v4054_v29 = vor.u32 %v4919_v38, %v4053_v22  ;;  %v4221_v55 = vld [vmem:[#allocation10 + $0x350] sm:$0xf]  ;;  %v4030_v59 = vor.u32 %v4913_v52, %v4029_v51  ;;  %v4305_v28 = vld [vmem:[#allocation10 + $0x3f8] sm:$0xf]  ;;  %v3993_v38 = vld [vmem:[#allocation10 + $0x188] sm:$0xf] }
 0x159   : > { %v4222_v62 = vor.u32 %v4961_v57, %v4221_v55  ;;  %v4426_v55 = vor.u32 %v5012_v54, %v4425_v53  ;;  %v5009_v57 = vld [vmem:[#allocation10 + $0x4d8] sm:$0xf0]  ;;  %v5035_v53 = vld [vmem:[#allocation12 + $0x68] sm:$0xff] }
 0x15a   : > { %2167 = vmatpush.bf16.msra.mxu0 %v4278_v2  ;;  %v4934_v2 = vld [vmem:[#allocation10 + $0x280] sm:$0xf0] }
 0x15b   : > { %2181 = vmatpush.bf16.msra.mxu1 %v4374_v3  ;;  %v4209_v3 = vld [vmem:[#allocation10 + $0x338] sm:$0xf]  ;;  %v787_v47 = vpop.f32.mrf.mxu3 }
 0x15c   : > { %2195 = vmatpush.bf16.msra.mxu2 %v3802_v56  ;;  %2259 = vmatpush.bf16.msrb.mxu3 %v4354_v16  ;;  %v4958_v56 = vld [vmem:[#allocation10 + $0x340] sm:$0xf0]  ;;  %v4955_v16 = vld [vmem:[#allocation10 + $0x328] sm:$0xf0] }
 0x15d   : > { %2168 = vmatmul.bf16.vlgmr.msra.gmra.mxu0 %v5961_v45  ;;  %v4210_v10 = vor.u32 %v4958_v56, %v4209_v3  ;;  %v4198_v22 = vor.u32 %v4955_v16, %v4197_v15 }
 0x15e   : > { %2216 = vmatpush.bf16.msrb.mxu0 %v4078_v4  ;;  %2182 = vmatmul.bf16.vlgmr.msra.gmra.mxu1 %v5964_v49  ;;  %v4306_v4 = vor.u32 %v4982_v60, %v4305_v28  ;;  %v4389_v60 = vld [vmem:[#allocation10 + $0x4a0] sm:$0xf] }
 0x15f   : > { %2230 = vmatpush.bf16.msrb.mxu1 %v4174_v8  ;;  %2196 = vmatmul.bf16.vlgmr.msra.gmra.mxu2 %v5949_v36  ;;  %v4042_v36 = vor.u32 %v4916_v35, %v4041_v34  ;;  %v4979_v8 = vld [vmem:[#allocation10 + $0x3e8] sm:$0xf0]  ;;  %v3994_v35 = vor.u32 %v4904_v23, %v3993_v38 }
 0x160   : > { %2244 = vmatpush.bf16.msrb.mxu2 %v4270_v9  ;;  %2260 = vmatpush.bf16.msrb.mxu3 %v4342_v27  ;;  %v4114_v9 = vor.u32 %v4934_v2, %v4113_v1  ;;  %v4952_v27 = vld [vmem:[#allocation10 + $0x310] sm:$0xf0] }
 0x161   : > { %v4186_v42 = vor.u32 %v4952_v27, %v4185_v26  ;;  %v5052_v26 = vld [vmem:[#allocation12 + $0xf0] sm:$0xff] }
 0x162   : > { %2217 = vmatpush.bf16.msrb.mxu0 %v4066_v17  ;;  %v4294_v17 = vor.u32 %v4979_v8, %v4293_v6 }
 0x163   : > { %2231 = vmatpush.bf16.msrb.mxu1 %v4162_v20  ;;  %v4976_v20 = vld [vmem:[#allocation10 + $0x3d0] sm:$0xf0] }
 0x164   : > { %2245 = vmatpush.bf16.msrb.mxu2 %v4258_v21  ;;  %2261 = vmatpush.bf16.msrb.mxu3 %v4330_v41  ;;  %v4102_v21 = vor.u32 %v4931_v14, %v4101_v13  ;;  %v4282_v31 = vor.u32 %v4976_v20, %v4281_v19  ;;  %v5018_v41 = vld [vmem:[#allocation10 + $0x520] sm:$0xf0]  ;;  %v5029_v13 = vld [vmem:[#allocation12 + $0x38] sm:$0xff] }
 0x165   : > { %v5053_v14 = vld [vmem:[#allocation12 + $0xf8] sm:$0xff] }
 0x166   : > { %2218 = vmatpush.bf16.msrb.mxu0 %v4054_v29  ;;  %v771_v29 = vpop.f32.mrf.mxu2 }
 0x167   : > { %2232 = vmatpush.bf16.msrb.mxu1 %v4150_v32  ;;  %v4461_v32 = vld [vmem:[#allocation10 + $0x530] sm:$0xf]  ;;  %v5977_v34 = vadd.f32 %v785_v30, %v771_v29 }
 0x168   : > { %2246 = vmatpush.bf16.msrb.mxu2 %v4246_v33  ;;  %2262 = vmatpush.bf16.msrb.mxu3 %v4318_v58  ;;  %v5021_v33 = vld [vmem:[#allocation10 + $0x538] sm:$0xf0] }
 0x169   : > { %v4462_v43 = vor.u32 %v5021_v33, %v4461_v32 }
 0x16a   : > { %2219 = vmatpush.bf16.msrb.mxu0 %v4042_v36  ;;  %v4450_v36 = vor.u32 %v5018_v41, %v4449_v44  ;;  %v5037_v44 = vld [vmem:[#allocation12 + $0x78] sm:$0xff] }
 0x16b   : > { %2233 = vmatpush.bf16.msrb.mxu1 %v4138_v48  ;;  %v4437_v48 = vld [vmem:[#allocation10 + $0x500] sm:$0xf]  ;;  %v5049_v41 = vld [vmem:[#allocation12 + $0xd8] sm:$0xff] }
 0x16c   : > { %2247 = vmatpush.bf16.msrb.mxu2 %v4234_v50  ;;  %2263 = vmatpush.bf16.msrb.mxu3 %v4306_v4  ;;  %v5015_v50 = vld [vmem:[#allocation10 + $0x508] sm:$0xf0] }
 0x16d   : > { %v4438_v52 = vor.u32 %v5015_v50, %v4437_v48  ;;  %v5036_v48 = vld [vmem:[#allocation12 + $0x70] sm:$0xff] }
 0x16e   : > { %2220 = vmatpush.bf16.msrb.mxu0 %v4030_v59  ;;  %v773_v46 = vpop.f32.mrf.mxu2  ;;  %v4401_v59 = vld [vmem:[#allocation10 + $0x4b8] sm:$0xf]  ;;  %v5048_v50 = vld [vmem:[#allocation12 + $0xd0] sm:$0xff] }
 0x16f   : > { %2234 = vmatpush.bf16.msrb.mxu1 %v4126_v61  ;;  %v5981_v51 = vadd.f32 %v787_v47, %v773_v46  ;;  %v5003_v61 = vld [vmem:[#allocation10 + $0x4a8] sm:$0xf0]  ;;  %v5025_v47 = vld [vmem:[#allocation12 + $0x18] sm:$0xff] }
 0x170   : > { %2248 = vmatpush.bf16.msrb.mxu2 %v4222_v62  ;;  %2264 = vmatpush.bf16.msrb.mxu3 %v4294_v17  ;;  %v4377_v62 = vld [vmem:[#allocation10 + $0x488] sm:$0xf]  ;;  %v5028_v17 = vld [vmem:[#allocation12 + $0x30] sm:$0xff] }
 0x172   : > { %2221 = vmatpush.bf16.msrb.mxu0 %v4018_v5 }
 0x173   : > { %2235 = vmatpush.bf16.msrb.mxu1 %v4114_v9 }
 0x174   : > { %2249 = vmatpush.bf16.msrb.mxu2 %v4210_v10  ;;  %2265 = vmatpush.bf16.msrb.mxu3 %v4282_v31  ;;  %v5051_v31 = vld [vmem:[#allocation12 + $0xe8] sm:$0xff] }
 0x176   : > { %2222 = vmatpush.bf16.msrb.mxu0 %v4006_v18 }
 0x177   : > { %2236 = vmatpush.bf16.msrb.mxu1 %v4102_v21  ;;  %2266 = vmatmul.bf16.vlgmr.msrb.gmra.mxu3 %v5961_v45  ;;  %v4413_v45 = vld [vmem:[#allocation10 + $0x4d0] sm:$0xf] }
 0x178   : > { %2250 = vmatpush.bf16.msrb.mxu2 %v4198_v22  ;;  %v4414_v58 = vor.u32 %v5009_v57, %v4413_v45  ;;  %v5023_v45 = vld [vmem:[#allocation12 + $0x8] sm:$0xff] }
 0x17a   : > { %2223 = vmatpush.bf16.msrb.mxu0 %v3994_v35  ;;  %v5027_v35 = vld [vmem:[#allocation12 + $0x28] sm:$0xff] }
 0x17b   : > { %2237 = vmatpush.bf16.msrb.mxu1 %v4090_v40  ;;  %v5050_v40 = vld [vmem:[#allocation12 + $0xe0] sm:$0xff] }
 0x17c   : > { %2251 = vmatpush.bf16.msrb.mxu2 %v4186_v42 }
 0x17d   : > { %2224 = vmatmul.bf16.vlgmr.msrb.gmra.mxu0 %v5953_v39  ;;  %v5006_v39 = vld [vmem:[#allocation10 + $0x4c0] sm:$0xf0] }
 0x17e   : > { %2272 = vmatpush.bf16.msra.mxu0 %v4462_v43  ;;  %2238 = vmatmul.bf16.vlgmr.msrb.gmra.mxu1 %v5943_v7  ;;  %v4402_v28 = vor.u32 %v5006_v39, %v4401_v59  ;;  %v4390_v7 = vor.u32 %v5003_v61, %v4389_v60  ;;  %v5026_v43 = vld [vmem:[#allocation12 + $0x20] sm:$0xff] }
 0x17f   : > { %2252 = vmatmul.bf16.vlgmr.msrb.gmra.mxu2 %v5959_v37  ;;  %v5000_v37 = vld [vmem:[#allocation10 + $0x490] sm:$0xf0]  ;;  %3154 = vmatpush.bf16.msra.mxu1 %v5029_v13  ;;  %v5034_v59 = vld [vmem:[#allocation12 + $0x60] sm:$0xff]  ;;  %v5059_v13 = vld [vmem:[#allocation12 + $0x128] sm:$0xff] }
 0x180   : > { %v4378_v63 = vor.u32 %v5000_v37, %v4377_v62  ;;  %3168 = vmatpush.bf16.msra.mxu2 %v5037_v44  ;;  %v5046_v39 = vld [vmem:[#allocation12 + $0xc0] sm:$0xff]  ;;  %v5033_v37 = vld [vmem:[#allocation12 + $0x58] sm:$0xff] }
 0x182   : > { %2273 = vmatpush.bf16.msra.mxu0 %v4450_v36 }
 0x183   : > { %3155 = vmatpush.bf16.msra.mxu1 %v5028_v17  ;;  %v5082_v17 = vld [vmem:[#allocation12 + $0x1e0] sm:$0xff] }
 0x184   : > { %3169 = vmatpush.bf16.msra.mxu2 %v5036_v48 }
 0x186   : > { %2274 = vmatpush.bf16.msra.mxu0 %v4438_v52  ;;  %v5024_v52 = vld [vmem:[#allocation12 + $0x10] sm:$0xff] }
 0x187   : > { %3156 = vmatpush.bf16.msra.mxu1 %v5027_v35 }
 0x188   : > { %3170 = vmatpush.bf16.msra.mxu2 %v5035_v53 }
 0x18a   : > { %2275 = vmatpush.bf16.msra.mxu0 %v4426_v55  ;;  %v5047_v55 = vld [vmem:[#allocation12 + $0xc8] sm:$0xff] }
 0x18b   : > { %3157 = vmatpush.bf16.msra.mxu1 %v5026_v43  ;;  %v5080_v43 = vld [vmem:[#allocation12 + $0x1d0] sm:$0xff] }
 0x18c   : > { %3171 = vmatpush.bf16.msra.mxu2 %v5034_v59 }
 0x18e   : > { %2276 = vmatpush.bf16.msra.mxu0 %v4414_v58 }
 0x18f   : > { %3158 = vmatpush.bf16.msra.mxu1 %v5025_v47 }
 0x190   : > { %3172 = vmatpush.bf16.msra.mxu2 %v5033_v37 }
 0x192   : > { %2277 = vmatpush.bf16.msra.mxu0 %v4402_v28  ;;  %v5085_v28 = vld [vmem:[#allocation12 + $0x1f8] sm:$0xff] }
 0x193   : > { %3159 = vmatpush.bf16.msra.mxu1 %v5024_v52 }
 0x196   : > { %2278 = vmatpush.bf16.msra.mxu0 %v4390_v7  ;;  %v5022_v7 = vld [vmem:[#allocation12] sm:$0xff] }
 0x197   : > { %3160 = vmatpush.bf16.msra.mxu1 %v5023_v45 }
 0x198   : > { %v2043_v6 = vpop.f32.mrf.mxu3 }
 0x19a   : > { %2279 = vmatpush.bf16.msra.mxu0 %v4378_v63  ;;  %v2001_v0 = vpop.f32.mrf.mxu0  ;;  %v5061_v63 = vld [vmem:[#allocation12 + $0x138] sm:$0xff] }
 0x19b   : > { %v2015_v1 = vpop.f32.mrf.mxu1  ;;  %3161 = vmatpush.bf16.msra.mxu1 %v5022_v7 }
 0x19c   : > { %v2016_v4 = vadd.f32 %v2015_v1, %v2001_v0 }
 0x19d   : > { %2280 = vmatmul.bf16.vlgmr.msra.gmra.mxu0 %v5964_v49 }
 0x19e   : > { %3196 = vmatpush.bf16.msrb.mxu0 %v5053_v14  ;;  %v5083_v14 = vld [vmem:[#allocation12 + $0x1e8] sm:$0xff] }
 0x19f   : > { %3210 = vmatpush.bf16.msrb.mxu1 %v5061_v63 }
 0x1a0   : > { %v2045_v18 = vpop.f32.mrf.mxu3 }
 0x1a2   : > { %v2029_v2 = vpop.f32.mrf.mxu2  ;;  %v2003_v3 = vpop.f32.mrf.mxu0  ;;  %3197 = vmatpush.bf16.msrb.mxu0 %v5052_v26  ;;  %v5081_v26 = vld [vmem:[#allocation12 + $0x1d8] sm:$0xff] }
 0x1a3   : > { %v2017_v56 = vpop.f32.mrf.mxu1  ;;  %v2030_v5 = vadd.f32 %v2029_v2, %v2016_v4  ;;  %v5084_v2 = vld [vmem:[#allocation12 + $0x1f0] sm:$0xff] }
 0x1a4   : > { %v2018_v11 = vadd.f32 %v2017_v56, %v2003_v3  ;;  %v5032_v56 = vld [vmem:[#allocation12 + $0x50] sm:$0xff] }
 0x1a5   : > { %v2044_v9 = vadd.f32 %v2043_v6, %v2030_v5  ;;  %v5060_v4 = vld [vmem:[#allocation12 + $0x130] sm:$0xff]  ;;  %3173 = vmatpush.bf16.msra.mxu2 %v5032_v56 }
 0x1a6   : > { %3198 = vmatpush.bf16.msrb.mxu0 %v5051_v31  ;;  %3211 = vmatpush.bf16.msrb.mxu1 %v5060_v4  ;;  %v2347_v31 = vld [vmem:[#allocation3 + $0x50] sm:$0x1] }
 0x1a8   : > { %v2099_v42 = vpop.f32.mrf.mxu3 }
 0x1aa   : > { %v2031_v8 = vpop.f32.mrf.mxu2  ;;  %v2057_v10 = vpop.f32.mrf.mxu0  ;;  %3199 = vmatpush.bf16.msrb.mxu0 %v5050_v40  ;;  %3212 = vmatpush.bf16.msrb.mxu1 %v5059_v13 }
 0x1ab   : > { %v2058_v12 = vadd.f32 %v2057_v10, %v2044_v9  ;;  %v2071_v15 = vpop.f32.mrf.mxu1  ;;  %v2032_v16 = vadd.f32 %v2031_v8, %v2018_v11 }
 0x1ad   : > { %v2072_v49 = vadd.f32 %v2071_v15, %v2058_v12  ;;  %v2046_v20 = vadd.f32 %v2045_v18, %v2032_v16  ;;  %v5031_v12 = vld [vmem:[#allocation12 + $0x48] sm:$0xff]  ;;  %v5030_v18 = vld [vmem:[#allocation12 + $0x40] sm:$0xff] }
 0x1ae   : > { %3200 = vmatpush.bf16.msrb.mxu0 %v5049_v41  ;;  %3174 = vmatpush.bf16.msra.mxu2 %v5031_v12 }
 0x1b0   : > { %v2101_v54 = vpop.f32.mrf.mxu3 }
 0x1b2   : > { %v2085_v19 = vpop.f32.mrf.mxu2  ;;  %v2059_v22 = vpop.f32.mrf.mxu0  ;;  %3201 = vmatpush.bf16.msrb.mxu0 %v5048_v50  ;;  %3175 = vmatpush.bf16.msra.mxu2 %v5030_v18  ;;  %v5045_v50 = vld [vmem:[#allocation12 + $0xb8] sm:$0xff] }
 0x1b3   : > { %v2086_v21 = vadd.f32 %v2085_v19, %v2072_v49  ;;  %v2060_v23 = vadd.f32 %v2059_v22, %v2046_v20  ;;  %v2073_v25 = vpop.f32.mrf.mxu1  ;;  %v5058_v19 = vld [vmem:[#allocation12 + $0x120] sm:$0xff]  ;;  %3182 = vmatpush.bf16.msra.mxu3 %v5045_v50 }
 0x1b4   : > { %3213 = vmatpush.bf16.msrb.mxu1 %v5058_v19 }
 0x1b5   : > { %vm2286_vm3 = vcmp.gt.f32.partialorder %v2086_v21, 0.0  ;;  %v2292_v38 = vmul.f32 0.1, %v2086_v21  ;;  %v2074_v27 = vadd.f32 %v2073_v25, %v2060_v23  ;;  %v2321_v23 = vld [vmem:[#allocation3 + $0x8] sm:$0x80] }
 0x1b6   : > { %3202 = vmatpush.bf16.msrb.mxu0 %v5047_v55 }
 0x1b7   : > { %v5986_v24 = vsel %vm2286_vm3, %v2086_v21, %v2292_v38  ;;  %v2320_v38 = vld [vmem:[#allocation3] sm:$0x80] }
 0x1b8   : > { %2314 = vst [vmem:[#allocation3 + $0x18] sm:$0xff] %v5986_v24  ;;  %v2329_v35 = vpack.c.bf16 %v2321_v23, %v2320_v38 }
 0x1ba   : > { %v2087_v29 = vpop.f32.mrf.mxu2  ;;  %v2113_v36 = vpop.f32.mrf.mxu0  ;;  %3203 = vmatpush.bf16.msrb.mxu0 %v5046_v39  ;;  %v2362_v52 = vunpack.c.h.b16 %v2329_v35 }
 0x1bb   : > { %v2088_v30 = vadd.f32 %v2087_v29, %v2074_v27  ;;  %v2127_v46 = vpop.f32.mrf.mxu1  ;;  %v2114_v57 = vadd.f32 %v2113_v36, %v2099_v42  ;;  %v2155_v1 = vpop.f32.mrf.mxu3  ;;  %v5057_v29 = vld [vmem:[#allocation12 + $0x118] sm:$0xff]  ;;  %v5056_v36 = vld [vmem:[#allocation12 + $0x110] sm:$0xff] }
 0x1bc   : > { %3214 = vmatpush.bf16.msrb.mxu1 %v5057_v29 }
 0x1bd   : > { %vm2289_vm4 = vcmp.gt.f32.partialorder %v2088_v30, 0.0  ;;  %v2295_v32 = vmul.f32 0.1, %v2088_v30  ;;  %v2128_v62 = vadd.f32 %v2127_v46, %v2114_v57  ;;  %v2361_v46 = vunpack.c.l.b16 %v2329_v35  ;;  %v5055_v57 = vld [vmem:[#allocation12 + $0x108] sm:$0xff] }
 0x1be   : > { %3252 = vmatpush.bf16.msra.mxu0 %v5085_v28 }
 0x1bf   : > { %v5989_v33 = vsel %vm2289_vm4, %v2088_v30, %v2295_v32  ;;  %v2346_v30 = vld [vmem:[#allocation3 + $0x48] sm:$0x1]  ;;  %v2340_v55 = vld [vmem:[#allocation3 + $0x18] sm:$0xfe] }
 0x1c0   : > { %2317 = vst [vmem:[#allocation3 + $0x30] sm:$0xff] %v5989_v33  ;;  %v2353_v44 = vpack.c.bf16 %v2347_v31, %v2346_v30  ;;  %3215 = vmatpush.bf16.msrb.mxu1 %v5056_v36 }
 0x1c2   : > { %v2141_v58 = vpop.f32.mrf.mxu2  ;;  %v2115_v60 = vpop.f32.mrf.mxu0  ;;  %3253 = vmatpush.bf16.msra.mxu0 %v5084_v2  ;;  %v2421_v45 = vunpack.c.h.b16 %v2353_v44  ;;  %v2420_v39 = vunpack.c.l.b16 %v2353_v44 }
 0x1c3   : > { %v2129_v61 = vpop.f32.mrf.mxu1  ;;  %v2142_v0 = vadd.f32 %v2141_v58, %v2128_v62  ;;  %v2116_v3 = vadd.f32 %v2115_v60, %v2101_v54  ;;  %v2157_v20 = vpop.f32.mrf.mxu3  ;;  %v5079_v54 = vld [vmem:[#allocation12 + $0x1c8] sm:$0xff]  ;;  %v5044_v58 = vld [vmem:[#allocation12 + $0xb0] sm:$0xff]  ;;  %v5078_v62 = vld [vmem:[#allocation12 + $0x1c0] sm:$0xff] }
 0x1c4   : > { %v5994_v37 = vpack.c.b16 %v2421_v45, %v2421_v45  ;;  %3216 = vmatpush.bf16.msrb.mxu1 %v5055_v57  ;;  %3183 = vmatpush.bf16.msra.mxu3 %v5044_v58  ;;  %v2426_v2 = vpack.c.b16 %v2420_v39, %v2420_v39  ;;  %v5042_v57 = vld [vmem:[#allocation12 + $0xa0] sm:$0xff] }
 0x1c5   : > { %v2156_v5 = vadd.f32 %v2155_v1, %v2142_v0  ;;  %v2130_v10 = vadd.f32 %v2129_v61, %v2116_v3  ;;  %v5054_v0 = vld [vmem:[#allocation12 + $0x100] sm:$0xff] }
 0x1c6   : > { %3254 = vmatpush.bf16.msra.mxu0 %v5083_v14  ;;  %v2435_v14 = vrot.slane %v5994_v37, 5  ;;  %v5041_v37 = vld [vmem:[#allocation12 + $0x98] sm:$0xff] }
 0x1c7   : > { %v2326_v3 = vld [vmem:[#allocation3 + $0x30] sm:$0x7f] }
 0x1c8   : > { %3217 = vmatpush.bf16.msrb.mxu1 %v5054_v0 }
 0x1ca   : > { %v2143_v6 = vpop.f32.mrf.mxu2  ;;  %3255 = vmatpush.bf16.msra.mxu0 %v5082_v17 }
 0x1cb   : > { %v2144_v15 = vadd.f32 %v2143_v6, %v2130_v10 }
 0x1cd   : > { %v2158_v21 = vadd.f32 %v2157_v20, %v2144_v15 }
 0x1ce   : > { %3256 = vmatpush.bf16.msra.mxu0 %v5081_v26 }
 0x1d2   : > { %3257 = vmatpush.bf16.msra.mxu0 %v5080_v43 }
 0x1d6   : > { %3258 = vmatpush.bf16.msra.mxu0 %v5079_v54  ;;  %v5069_v54 = vld [vmem:[#allocation12 + $0x178] sm:$0xff] }
 0x1d7   : > { %3224 = vmatpush.bf16.msrb.mxu2 %v5069_v54 }
 0x1da   : > { %v2169_v8 = vpop.f32.mrf.mxu0  ;;  %3259 = vmatpush.bf16.msra.mxu0 %v5078_v62 }
 0x1db   : > { %v2183_v9 = vpop.f32.mrf.mxu1  ;;  %v2170_v11 = vadd.f32 %v2169_v8, %v2156_v5 }
 0x1dd   : > { %v2184_v16 = vadd.f32 %v2183_v9, %v2170_v11 }
 0x1df   : > { %vm2287_vm5 = vcmp.gt.f32.partialorder %v2184_v16, 0.0  ;;  %v2293_v49 = vmul.f32 0.1, %v2184_v16 }
 0x1e1   : > { %v2299_v22 = vsel %vm2287_vm5, %v2184_v16, %v2293_v49  ;;  %v2433_v49 = vrot.slane %v2426_v2, 5 }
 0x1e2   : > { %2315 = vst [vmem:[#allocation3 + $0x20] sm:$0xff] %v2299_v22  ;;  %v2171_v25 = vpop.f32.mrf.mxu0  ;;  %v2331_v40 = vpack.c.bf16 %v2299_v22, %v5986_v24 }
 0x1e3   : > { %v2172_v27 = vadd.f32 %v2171_v25, %v2158_v21  ;;  %v2185_v32 = vpop.f32.mrf.mxu1 }
 0x1e4   : > { %v2364_v47 = vunpack.c.l.b16 %v2331_v40  ;;  %v2365_v53 = vunpack.c.h.b16 %v2331_v40 }
 0x1e5   : > { %v2186_v42 = vadd.f32 %v2185_v32, %v2172_v27 }
 0x1e6   : > { %v2370_v28 = vpack.c.b16 %v2364_v47, %v2361_v46  ;;  %v2371_v7 = vpack.c.b16 %v2365_v53, %v2362_v52 }
 0x1e7   : > { %vm2290_vm6 = vcmp.gt.f32.partialorder %v2186_v42, 0.0  ;;  %v2296_v41 = vmul.f32 0.1, %v2186_v42 }
 0x1e8   : > { %v2585_v56 = vshrl.u32 %v2370_v28, 16  ;;  %v2588_v6 = vshll.u32 %v2370_v28, 16  ;;  %v2602_v12 = vshrl.u32 %v2371_v7, 16  ;;  %v2605_v13 = vshll.u32 %v2371_v7, 16  ;;  %v5093_v28 = vld [vmem:[#allocation12 + $0x238] sm:$0xff] }
 0x1e9   : > { %v2302_v48 = vsel %vm2290_vm6, %v2186_v42, %v2296_v41  ;;  %v2341_v59 = vld [vmem:[#allocation3 + $0x20] sm:$0xfe]  ;;  %v5997_v41 = vpop.f32.mrf.mxu2 }
 0x1ea   : > { %2318 = vst [vmem:[#allocation3 + $0x38] sm:$0xff] %v2302_v48  ;;  %v2338_v24 = vpack.c.bf16 %v2302_v48, %v5989_v33  ;;  %v2349_v60 = vpack.c.bf16 %v2341_v59, %v2340_v55  ;;  %v5043_v33 = vld [vmem:[#allocation12 + $0xa8] sm:$0xff]  ;;  %v2587_v21 = vrot.slane %v2585_v56, 3  ;;  %v2590_v22 = vrot.slane %v2588_v6, 4  ;;  %v2211_v56 = vpop.f32.mrf.mxu3 }
 0x1eb   : > { %3184 = vmatpush.bf16.msra.mxu3 %v5043_v33  ;;  %v2604_v27 = vrot.slane %v2602_v12, 3  ;;  %v2607_v29 = vrot.slane %v2605_v13, 4  ;;  %v5068_v33 = vld [vmem:[#allocation12 + $0x170] sm:$0xff] }
 0x1ec   : > { %v2378_v61 = vunpack.c.l.b16 %v2338_v24  ;;  %v2379_v1 = vunpack.c.h.b16 %v2338_v24  ;;  %v2414_v4 = vunpack.c.l.b16 %v2349_v60  ;;  %v2415_v10 = vunpack.c.h.b16 %v2349_v60  ;;  %3225 = vmatpush.bf16.msrb.mxu2 %v5068_v33 }
 0x1ed   : > { %v2591_v55 = vor.u32 %v2590_v22, %v2587_v21  ;;  %v2608_v59 = vor.u32 %v2607_v29, %v2604_v27  ;;  %v5039_v29 = vld [vmem:[#allocation12 + $0x88] sm:$0xff] }
 0x1ee   : > { %v2381_v63 = vpack.c.b16 %v2378_v61, %v2364_v47  ;;  %v2382_v17 = vpack.c.b16 %v2379_v1, %v2365_v53  ;;  %v2423_v20 = vpack.c.b16 %v2378_v61, %v2414_v4  ;;  %v2424_v23 = vpack.c.b16 %v2379_v1, %v2415_v10 }
 0x1ef   : > { %3185 = vmatpush.bf16.msra.mxu3 %v5042_v57  ;;  %v5076_v57 = vld [vmem:[#allocation12 + $0x1b0] sm:$0xff] }
 0x1f0   : > { %v2385_v8 = vshrl.u32 %v2381_v63, 16  ;;  %v2388_v9 = vshll.u32 %v2381_v63, 16  ;;  %v2393_v32 = vshrl.u32 %v2382_v17, 16  ;;  %v2396_v35 = vshll.u32 %v2382_v17, 16 }
 0x1f1   : > { %v2327_v5 = vld [vmem:[#allocation3 + $0x38] sm:$0x7f]  ;;  %v2430_v44 = vrot.slane %v2423_v20, 5  ;;  %v2431_v48 = vrot.slane %v2424_v23, 5 }
 0x1f2   : > { %v2333_v11 = vpack.c.bf16 %v2327_v5, %v2326_v3  ;;  %v2387_v15 = vrot.slane %v2385_v8, 4  ;;  %v2390_v16 = vrot.slane %v2388_v9, 5  ;;  %v2395_v39 = vrot.slane %v2393_v32, 4 }
 0x1f3   : > { %v2434_v60 = vsel %vm2429_vm7, %v2430_v44, %v2433_v49  ;;  %v2398_v7 = vrot.slane %v2396_v35, 5  ;;  %v2436_v62 = vsel %vm2429_vm7, %v2431_v48, %v2435_v14  ;;  %v2663_v63 = vshrl.u32 %v2430_v44, 16  ;;  %3186 = vmatpush.bf16.msra.mxu3 %v5041_v37  ;;  %v2199_v49 = vpop.f32.mrf.mxu2 }
 0x1f4   : > { %v2367_v18 = vunpack.c.l.b16 %v2333_v11  ;;  %v2368_v19 = vunpack.c.h.b16 %v2333_v11  ;;  %v2391_v38 = vor.u32 %v2390_v16, %v2387_v15  ;;  %v2680_v1 = vshrl.u32 %v2431_v48, 16  ;;  %v5092_v11 = vld [vmem:[#allocation12 + $0x230] sm:$0xff]  ;;  %v5067_v16 = vld [vmem:[#allocation12 + $0x168] sm:$0xff] }
 0x1f5   : > { %v2666_v2 = vshll.u32 %v2430_v44, 16  ;;  %v2671_v3 = vshrl.u32 %v2434_v60, 16  ;;  %v2683_v5 = vshll.u32 %v2431_v48, 16  ;;  %v2665_v6 = vrot.slane %v2663_v63, 3  ;;  %3226 = vmatpush.bf16.msrb.mxu2 %v5067_v16 }
 0x1f6   : > { %v2373_v25 = vpack.c.b16 %v2367_v18, %v2367_v18  ;;  %v2374_v26 = vpack.c.b16 %v2368_v19, %v2368_v19  ;;  %v2636_v30 = vshrl.u32 %v2391_v38, 16  ;;  %v2639_v31 = vshll.u32 %v2391_v38, 16  ;;  %v5040_v19 = vld [vmem:[#allocation12 + $0x90] sm:$0xff] }
 0x1f7   : > { %v2674_v8 = vshll.u32 %v2434_v60, 16  ;;  %v2688_v9 = vshrl.u32 %v2436_v62, 16  ;;  %v2691_v10 = vshll.u32 %v2436_v62, 16  ;;  %v2668_v12 = vrot.slane %v2666_v2, 4  ;;  %3187 = vmatpush.bf16.msra.mxu3 %v5040_v19  ;;  %v5063_v62 = vld [vmem:[#allocation12 + $0x148] sm:$0xff]  ;;  %v5072_v19 = vld [vmem:[#allocation12 + $0x190] sm:$0xff] }
 0x1f8   : > { %v2593_v40 = vshrl.u32 %v2373_v25, 16  ;;  %v2596_v42 = vshll.u32 %v2373_v25, 16  ;;  %v2610_v43 = vshrl.u32 %v2374_v26, 16  ;;  %v2613_v36 = vshll.u32 %v2374_v26, 16  ;;  %v5091_v25 = vld [vmem:[#allocation12 + $0x228] sm:$0xff] }
 0x1f9   : > { %v2638_v46 = vrot.slane %v2636_v30, 3  ;;  %v2641_v47 = vrot.slane %v2639_v31, 4  ;;  %v2673_v13 = vrot.slane %v2671_v3, 3  ;;  %v2399_v14 = vor.u32 %v2398_v7, %v2395_v39  ;;  %v5066_v30 = vld [vmem:[#allocation12 + $0x160] sm:$0xff]  ;;  %v5075_v7 = vld [vmem:[#allocation12 + $0x1a8] sm:$0xff] }
 0x1fa   : > { %v2595_v50 = vrot.slane %v2593_v40, 3  ;;  %v2598_v52 = vrot.slane %v2596_v42, 4  ;;  %v2612_v53 = vrot.slane %v2610_v43, 3  ;;  %v2615_v45 = vrot.slane %v2613_v36, 4  ;;  %v2225_v18 = vpop.f32.mrf.mxu0  ;;  %v5090_v42 = vld [vmem:[#allocation12 + $0x220] sm:$0xff]  ;;  %v2213_v43 = vpop.f32.mrf.mxu3  ;;  %3227 = vmatpush.bf16.msrb.mxu2 %v5066_v30 }
 0x1fb   : > { %v2642_v24 = vor.u32 %v2641_v47, %v2638_v46  ;;  %v2676_v15 = vrot.slane %v2674_v8, 4  ;;  %v2669_v17 = vor.u32 %v2668_v12, %v2665_v6  ;;  %v2682_v21 = vrot.slane %v2680_v1, 3  ;;  %3188 = vmatpush.bf16.msra.mxu3 %v5039_v29  ;;  %v5038_v46 = vld [vmem:[#allocation12 + $0x80] sm:$0xff]  ;;  %v2239_v48 = vpop.f32.mrf.mxu1 }
 0x1fc   : > { %v2599_v58 = vor.u32 %v2598_v52, %v2595_v50  ;;  %v2616_v61 = vor.u32 %v2615_v45, %v2612_v53  ;;  %v2685_v22 = vrot.slane %v2683_v5, 4  ;;  %v2690_v38 = vrot.slane %v2688_v9, 3  ;;  %v5077_v50 = vld [vmem:[#allocation12 + $0x1b8] sm:$0xff]  ;;  %v5086_v8 = vld [vmem:[#allocation12 + $0x200] sm:$0xff] }
 0x1fd   : > { %3204 = vmatmul.bf16.vlgmr.msrb.gmra.mxu0 %v2642_v24  ;;  %v2677_v20 = vor.u32 %v2676_v15, %v2673_v13  ;;  %v2693_v23 = vrot.slane %v2691_v10, 4  ;;  %v2645_v26 = vshrl.u32 %v2399_v14, 16  ;;  %v2648_v27 = vshll.u32 %v2399_v14, 16  ;;  %v5065_v52 = vld [vmem:[#allocation12 + $0x158] sm:$0xff]  ;;  %v2322_v13 = vld [vmem:[#allocation3 + $0x10] sm:$0x80] }
 0x1fe   : > { %v2600_v0 = vsel %vm2583_vm8, %v2591_v55, %v2599_v58  ;;  %v2617_v4 = vsel %vm2583_vm8, %v2608_v59, %v2616_v61  ;;  %v2212_v32 = vadd.f32 %v2211_v56, %v5997_v41  ;;  %v2686_v35 = vor.u32 %v2685_v22, %v2682_v21  ;;  %v5089_v55 = vld [vmem:[#allocation12 + $0x218] sm:$0xff]  ;;  %3228 = vmatpush.bf16.msrb.mxu2 %v5065_v52  ;;  %v5064_v58 = vld [vmem:[#allocation12 + $0x150] sm:$0xff]  ;;  %v5074_v56 = vld [vmem:[#allocation12 + $0x1a0] sm:$0xff] }
 0x1ff   : > { %3162 = vmatmul.bf16.vlgmr.msra.gmra.mxu1 %v2600_v0  ;;  %3176 = vmatmul.bf16.vlgmr.msra.gmra.mxu2 %v2617_v4  ;;  %v6004_v31 = vsel %vm2583_vm8, %v2669_v17, %v2677_v20  ;;  %v2694_v40 = vor.u32 %v2693_v23, %v2690_v38  ;;  %v2647_v44 = vrot.slane %v2645_v26, 3  ;;  %v2650_v36 = vrot.slane %v2648_v27, 4  ;;  %v5087_v0 = vld [vmem:[#allocation12 + $0x208] sm:$0xff]  ;;  %v5062_v4 = vld [vmem:[#allocation12 + $0x140] sm:$0xff]  ;;  %v2348_v9 = vld [vmem:[#allocation3 + $0x58] sm:$0x1] }
 0x200   : > { %3266 = vmatpush.bf16.msra.mxu1 %v5093_v28  ;;  %v2226_v47 = vadd.f32 %v2225_v18, %v2212_v32  ;;  %3189 = vmatpush.bf16.msra.mxu3 %v5038_v46  ;;  %v2214_v59 = vadd.f32 %v2213_v43, %v2199_v49  ;;  %v5088_v28 = vld [vmem:[#allocation12 + $0x210] sm:$0xff]  ;;  %v2354_v14 = vpack.c.bf16 %v2348_v9, %v2348_v9  ;;  %v5071_v26 = vld [vmem:[#allocation12 + $0x188] sm:$0xff] }
 0x201   : > { %v2695_v54 = vsel %vm2583_vm8, %v2686_v35, %v2694_v40  ;;  %v2651_v45 = vor.u32 %v2650_v36, %v2647_v44  ;;  %v2330_v49 = vpack.c.bf16 %v2322_v13, %v2322_v13 }
 0x202   : > { %v2253_v53 = vpop.f32.mrf.mxu2  ;;  %v2227_v41 = vpop.f32.mrf.mxu0  ;;  %v2240_v24 = vadd.f32 %v2239_v48, %v2226_v47  ;;  %3229 = vmatpush.bf16.msrb.mxu2 %v5064_v58  ;;  %v2422_v20 = vunpack.c.l.b16 %v2354_v14 }
 0x203   : > { %v2267_v60 = vpop.f32.mrf.mxu3  ;;  %v2228_v61 = vadd.f32 %v2227_v41, %v2214_v59  ;;  %v2241_v63 = vpop.f32.mrf.mxu1  ;;  %v2363_v38 = vunpack.c.l.b16 %v2330_v49  ;;  %v5099_v49 = vld [vmem:[#allocation13 + $0x28] sm:$0xff] }
 0x204   : > { %3267 = vmatpush.bf16.msra.mxu1 %v5092_v11  ;;  %3238 = vmatpush.bf16.msrb.mxu3 %v5077_v50  ;;  %v2254_v39 = vadd.f32 %v2253_v53, %v2240_v24  ;;  %v5073_v11 = vld [vmem:[#allocation12 + $0x198] sm:$0xff]  ;;  %v2428_v30 = vpack.c.b16 %v2422_v20, %v2422_v20 }
 0x205   : > { %v2242_v2 = vadd.f32 %v2241_v63, %v2228_v61  ;;  %v5097_v20 = vld [vmem:[#allocation13 + $0x18] sm:$0xff] }
 0x206   : > { %v2268_v37 = vadd.f32 %v2267_v60, %v2254_v39  ;;  %3230 = vmatpush.bf16.msrb.mxu2 %v5063_v62  ;;  %v2437_v44 = vrot.slane %v2428_v30, 5 }
 0x208   : > { %3268 = vmatpush.bf16.msra.mxu1 %v5091_v25  ;;  %3239 = vmatpush.bf16.msrb.mxu3 %v5076_v57 }
 0x20a   : > { %v2255_v1 = vpop.f32.mrf.mxu2  ;;  %3231 = vmatpush.bf16.msrb.mxu2 %v5062_v4 }
 0x20b   : > { %v2256_v5 = vadd.f32 %v2255_v1, %v2242_v2  ;;  %v2269_v12 = vpop.f32.mrf.mxu3 }
 0x20c   : > { %3269 = vmatpush.bf16.msra.mxu1 %v5090_v42  ;;  %3240 = vmatpush.bf16.msrb.mxu3 %v5075_v7  ;;  %v5070_v42 = vld [vmem:[#allocation12 + $0x180] sm:$0xff] }
 0x20d   : > { %3260 = vmatmul.bf16.vlgmr.msra.gmra.mxu0 %v2695_v54  ;;  %v2270_v15 = vadd.f32 %v2269_v12, %v2256_v5 }
 0x20f   : > { %3218 = vmatmul.bf16.vlgmr.msrb.gmra.mxu1 %v2651_v45 }
 0x210   : > { %3270 = vmatpush.bf16.msra.mxu1 %v5089_v55  ;;  %3241 = vmatpush.bf16.msrb.mxu3 %v5074_v56 }
 0x214   : > { %3271 = vmatpush.bf16.msra.mxu1 %v5088_v28  ;;  %3242 = vmatpush.bf16.msrb.mxu3 %v5073_v11 }
 0x218   : > { %3272 = vmatpush.bf16.msra.mxu1 %v5087_v0  ;;  %3243 = vmatpush.bf16.msrb.mxu3 %v5072_v19  ;;  %v5098_v19 = vld [vmem:[#allocation13 + $0x20] sm:$0xff] }
 0x21a   : > { %v2281_v33 = vpop.f32.mrf.mxu0 }
 0x21b   : > { %v2282_v3 = vadd.f32 %v2281_v33, %v2268_v37 }
 0x21c   : > { %3273 = vmatpush.bf16.msra.mxu1 %v5086_v8  ;;  %3244 = vmatpush.bf16.msrb.mxu3 %v5071_v26  ;;  %v5095_v26 = vld [vmem:[#allocation13 + $0x8] sm:$0xff] }
 0x21d   : > { %vm2288_vm9 = vcmp.gt.f32.partialorder %v2282_v3, 0.0  ;;  %v2294_v6 = vmul.f32 0.1, %v2282_v3 }
 0x21f   : > { %v2300_v10 = vsel %vm2288_vm9, %v2282_v3, %v2294_v6 }
 0x220   : > { %2316 = vst [vmem:[#allocation3 + $0x28] sm:$0xff] %v2300_v10  ;;  %v2332_v18 = vpack.c.bf16 %v2300_v10, %v2300_v10  ;;  %3245 = vmatpush.bf16.msrb.mxu3 %v5070_v42 }
 0x222   : > { %v2283_v16 = vpop.f32.mrf.mxu0  ;;  %v2366_v23 = vunpack.c.l.b16 %v2332_v18 }
 0x223   : > { %v2284_v17 = vadd.f32 %v2283_v16, %v2270_v15  ;;  %v5101_v15 = vld [vmem:[#allocation13 + $0x38] sm:$0xff]  ;;  %v5100_v16 = vld [vmem:[#allocation13 + $0x30] sm:$0xff] }
 0x224   : > { %v2372_v40 = vpack.c.b16 %v2366_v23, %v2363_v38  ;;  %3347 = vmatpush.bf16.msra.mxu2 %v5101_v15  ;;  %v5096_v38 = vld [vmem:[#allocation13 + $0x10] sm:$0xff] }
 0x225   : > { %vm2291_vm10 = vcmp.gt.f32.partialorder %v2284_v17, 0.0  ;;  %v2297_v21 = vmul.f32 0.1, %v2284_v17 }
 0x226   : > { %v2619_v52 = vshrl.u32 %v2372_v40, 16  ;;  %v2622_v39 = vshll.u32 %v2372_v40, 16 }
 0x227   : > { %v2303_v22 = vsel %vm2291_vm10, %v2284_v17, %v2297_v21  ;;  %v2342_v25 = vld [vmem:[#allocation3 + $0x28] sm:$0xfe] }
 0x228   : > { %2319 = vst [vmem:[#allocation3 + $0x40] sm:$0xff] %v2303_v22  ;;  %v2350_v27 = vpack.c.bf16 %v2342_v25, %v2342_v25  ;;  %v2352_v29 = vpack.c.bf16 %v2303_v22, %v2303_v22  ;;  %v2621_v2 = vrot.slane %v2619_v52, 3  ;;  %v2624_v3 = vrot.slane %v2622_v39, 4  ;;  %3348 = vmatpush.bf16.msra.mxu2 %v5100_v16  ;;  %v5106_v52 = vld [vmem:[#allocation15 + $0x20] sm:$0xff] }
 0x22a   : > { %v2416_v32 = vunpack.c.l.b16 %v2350_v27  ;;  %v2419_v35 = vunpack.c.l.b16 %v2352_v29  ;;  %v2625_v12 = vor.u32 %v2624_v3, %v2621_v2  ;;  %v5109_v27 = vld [vmem:[#allocation15 + $0x38] sm:$0xff] }
 0x22c   : > { %v2425_v43 = vpack.c.b16 %v2419_v35, %v2416_v32  ;;  %v2383_v36 = vpack.c.b16 %v2419_v35, %v2366_v23  ;;  %3349 = vmatpush.bf16.msra.mxu2 %v5099_v49  ;;  %v5094_v32 = vld [vmem:[#allocation13] sm:$0xff]  ;;  %v5108_v35 = vld [vmem:[#allocation15 + $0x30] sm:$0xff] }
 0x22e   : > { %v2432_v46 = vrot.slane %v2425_v43, 5  ;;  %v2401_v47 = vshrl.u32 %v2383_v36, 16  ;;  %v2404_v48 = vshll.u32 %v2383_v36, 16  ;;  %v5107_v36 = vld [vmem:[#allocation15 + $0x28] sm:$0xff] }
 0x22f   : > { %v2328_v50 = vld [vmem:[#allocation3 + $0x40] sm:$0x7f] }
 0x230   : > { %v2334_v53 = vpack.c.bf16 %v2328_v50, %v2328_v50  ;;  %v2438_v54 = vsel %vm2429_vm7, %v2432_v46, %v2437_v44  ;;  %v2697_v55 = vshrl.u32 %v2432_v46, 16  ;;  %v2700_v41 = vshll.u32 %v2432_v46, 16  ;;  %3350 = vmatpush.bf16.msra.mxu2 %v5098_v19 }
 0x231   : > { %v2705_v45 = vshrl.u32 %v2438_v54, 16  ;;  %v2708_v24 = vshll.u32 %v2438_v54, 16  ;;  %v2403_v57 = vrot.slane %v2401_v47, 4  ;;  %v2406_v58 = vrot.slane %v2404_v48, 5 }
 0x232   : > { %v2369_v59 = vunpack.c.l.b16 %v2334_v53  ;;  %v2699_v28 = vrot.slane %v2697_v55, 3  ;;  %v2702_v60 = vrot.slane %v2700_v41, 4 }
 0x233   : > { %v2707_v61 = vrot.slane %v2705_v45, 3  ;;  %v2710_v7 = vrot.slane %v2708_v24, 4  ;;  %v2407_v62 = vor.u32 %v2406_v58, %v2403_v57 }
 0x234   : > { %v2375_v37 = vpack.c.b16 %v2369_v59, %v2369_v59  ;;  %v2703_v63 = vor.u32 %v2702_v60, %v2699_v28  ;;  %3351 = vmatpush.bf16.msra.mxu2 %v5097_v20 }
 0x235   : > { %v2711_v0 = vor.u32 %v2710_v7, %v2707_v61  ;;  %v2654_v1 = vshrl.u32 %v2407_v62, 16  ;;  %v2657_v33 = vshll.u32 %v2407_v62, 16 }
 0x236   : > { %v2627_v56 = vshrl.u32 %v2375_v37, 16  ;;  %v2630_v4 = vshll.u32 %v2375_v37, 16 }
 0x237   : > { %v2712_v5 = vsel %vm2583_vm8, %v2703_v63, %v2711_v0  ;;  %v2656_v6 = vrot.slane %v2654_v1, 3  ;;  %v2659_v8 = vrot.slane %v2657_v33, 4  ;;  %v5280_v0 = vld [vmem:[#allocation2 + $0x8] sm:$0xff]  ;;  %v5281_v33 = vld [vmem:[#allocation2 + $0x10] sm:$0xff] }
 0x238   : > { %v2629_v9 = vrot.slane %v2627_v56, 3  ;;  %v2632_v10 = vrot.slane %v2630_v4, 4  ;;  %3274 = vmatmul.bf16.vlgmr.msra.gmra.mxu1 %v2712_v5  ;;  %3352 = vmatpush.bf16.msra.mxu2 %v5096_v38  ;;  %v5105_v56 = vld [vmem:[#allocation15 + $0x18] sm:$0xff]  ;;  %v5104_v4 = vld [vmem:[#allocation15 + $0x10] sm:$0xff]  ;;  %v5103_v5 = vld [vmem:[#allocation15 + $0x8] sm:$0xff] }
 0x239   : > { %v2660_v11 = vor.u32 %v2659_v8, %v2656_v6  ;;  %v5102_v6 = vld [vmem:[#allocation15] sm:$0xff] }
 0x23a   : > { %v2633_v13 = vor.u32 %v2632_v10, %v2629_v9  ;;  %v5278_v10 = vld [vmem:[%s6128_s13] ss:$0 sm:$0xff]  ;;  %s5506_s13 = sshra.s32 %s3478_s7, 4  ;;  %s5507_s13 = int_to_ptr.hbm [resolvable:$true] %s5506_s13 }
 0x23b   : > { %3232 = vmatmul.bf16.vlgmr.msrb.gmra.mxu2 %v2660_v11  ;;  %s5508_s3 = scalar_lea.hbm %s5507_s13, 16  ;;  %p5513_p0 = scmp.lt.s32.totalorder %s5507_s13, %s6130_s26 }
 0x23c   : > { %v2634_v14 = vsel %vm2583_vm8, %v2625_v12, %v2633_v13  ;;  %3353 = vmatpush.bf16.msra.mxu2 %v5095_v26  ;;  %p5509_p1 = scmp.ne.s32.totalorder %s5507_s13, %s5508_s3  ;;  %p5514_p6 = scmp.lt.s32.totalorder %s5512_s4, %s5508_s3 }
 0x23d   : > { %3190 = vmatmul.bf16.vlgmr.msra.gmra.mxu3 %v2634_v14 }
 0x23e   : > { %3444 = vmatpush.bf16.msra.mxu3 %v5109_v27  ;;  %p5510_p3 = pnand %p5509_p1, %p5831_p2  ;;  %p5515_p10 = por %p5514_p6, %p5513_p0 }
 0x240   : > { %3354 = vmatpush.bf16.msra.mxu2 %v5094_v32  ;;  %p5511_p8 = pneg %p5510_p3 }
 0x242   : > { %3445 = vmatpush.bf16.msra.mxu3 %v5108_v35  ;;  %p5516_p7 = pnand %p5515_p10, %p5511_p8 }
 0x246   : > { %3446 = vmatpush.bf16.msra.mxu3 %v5107_v36 }
 0x24a   : > { %3447 = vmatpush.bf16.msra.mxu3 %v5106_v52 }
 0x24d   : > { %3246 = vmatmul.bf16.vlgmr.msrb.gmra.mxu3 %v6004_v31 }
 0x24e   : > { %3448 = vmatpush.bf16.msra.mxu3 %v5105_v56 }
 0x252   : > { %3449 = vmatpush.bf16.msra.mxu3 %v5104_v4 }
 0x256   : > { %3450 = vmatpush.bf16.msra.mxu3 %v5103_v5 }
 0x25a   : > { %3451 = vmatpush.bf16.msra.mxu3 %v5102_v6 }
 0x27a   : > { %v3205_v22 = vpop.f32.mrf.mxu0 }
 0x27c   : > { %v3163_v17 = vpop.f32.mrf.mxu1 }
 0x282   : > { %v3177_v21 = vpop.f32.mrf.mxu2  ;;  %v3207_v40 = vpop.f32.mrf.mxu0 }
 0x283   : > { %v3178_v31 = vadd.f32 %v3177_v21, %v3163_v17 }
 0x284   : > { %v3165_v18 = vpop.f32.mrf.mxu1 }
 0x28a   : > { %v3179_v29 = vpop.f32.mrf.mxu2  ;;  %v3261_v54 = vpop.f32.mrf.mxu0 }
 0x28b   : > { %v3180_v43 = vadd.f32 %v3179_v29, %v3165_v18 }
 0x28c   : > { %v3219_v23 = vpop.f32.mrf.mxu1 }
 0x292   : > { %v3263_v61 = vpop.f32.mrf.mxu0 }
 0x294   : > { %v3221_v46 = vpop.f32.mrf.mxu1 }
 0x2b5   : > { %v3275_v45 = vpop.f32.mrf.mxu1 }
 0x2bd   : > { %v3277_v37 = vpop.f32.mrf.mxu1 }
 0x2be   : > { %v3233_v48 = vpop.f32.mrf.mxu2 }
 0x2c0   : > { %v3191_v25 = vpop.f32.mrf.mxu3 }
 0x2c1   : > { %v3192_v30 = vadd.f32 %v3191_v25, %v3178_v31 }
 0x2c3   : > { %v3206_v44 = vadd.f32 %v3205_v22, %v3192_v30 }
 0x2c5   : > { %v3220_v50 = vadd.f32 %v3219_v23, %v3206_v44 }
 0x2c6   : > { %v3235_v58 = vpop.f32.mrf.mxu2 }
 0x2c7   : > { %v3234_v41 = vadd.f32 %v3233_v48, %v3220_v50 }
 0x2c8   : > { %v3193_v42 = vpop.f32.mrf.mxu3 }
 0x2c9   : > { %v3194_v47 = vadd.f32 %v3193_v42, %v3180_v43 }
 0x2cb   : > { %v3208_v53 = vadd.f32 %v3207_v40, %v3194_v47 }
 0x2cd   : > { %v3222_v24 = vadd.f32 %v3221_v46, %v3208_v53 }
 0x2cf   : > { %v3236_v59 = vadd.f32 %v3235_v58, %v3222_v24 }
 0x2d0   : > { %v3247_v55 = vpop.f32.mrf.mxu3 }
 0x2d1   : > { %v3248_v57 = vadd.f32 %v3247_v55, %v3234_v41 }
 0x2d3   : > { %v3262_v39 = vadd.f32 %v3261_v54, %v3248_v57 }
 0x2d5   : > { %v3276_v7 = vadd.f32 %v3275_v45, %v3262_v39 }
 0x2d7   : > { %v3280_v1 = vadd.f32 %v5280_v0, %v3276_v7 }
 0x2d8   : > { %v3249_v28 = vpop.f32.mrf.mxu3 }
 0x2d9   : > { %v3250_v60 = vadd.f32 %v3249_v28, %v3236_v59 }
 0x2db   : > { %v3264_v62 = vadd.f32 %v3263_v61, %v3250_v60 }
 0x2dd   : > { %v3278_v63 = vadd.f32 %v3277_v37, %v3264_v62 }
 0x2df   : > { %v3281_v2 = vadd.f32 %v5281_v33, %v3278_v63 }
 0x2e1   : > { %v3282_v3 = vpack.c.bf16 %v3281_v2, %v3280_v1 }
 0x2e3   : > { %3355 = vmatmul.bf16.vlgmr.msra.gmra.mxu2 %v3282_v3 }
 0x366   : > { %v3356_v8 = vpop.f32.mrf.mxu2 }
 0x367   : > { %v3361_v9 = vadd.f32 %v3356_v8, %v5977_v34  ;;  %v5279_v34 = vld [vmem:[%s6129_s25] ss:$0 sm:$0xff] }
 0x369   : > { %v3367_v11 = vadd.f32 %v5278_v10, %v3361_v9 }
 0x36b   : > { %v3371_v14 = vmul.f32 0.1, %v3367_v11  ;;  %vm3369_vm11 = vcmp.gt.f32.partialorder %v3367_v11, 0.0 }
 0x36d   : > { %v3373_v17 = vsel %vm3369_vm11, %v3367_v11, %v3371_v14 }
 0x36e   : > { %v3358_v12 = vpop.f32.mrf.mxu2 }
 0x36f   : > { %v3362_v13 = vadd.f32 %v3358_v12, %v5981_v51 }
 0x371   : > { %v3368_v15 = vadd.f32 %v5278_v10, %v3362_v13 }
 0x373   : > { %vm3370_vm12 = vcmp.gt.f32.partialorder %v3368_v15, 0.0  ;;  %v3372_v16 = vmul.f32 0.1, %v3368_v15 }
 0x375   : > { %v3374_v49 = vsel %vm3370_vm12, %v3368_v15, %v3372_v16 }
 0x376   : > { %v3375_v18 = vpack.c.bf16 %v3374_v49, %v3373_v17 }
 0x378   : > { %3452 = vmatmul.bf16.vlgmr.msra.gmra.mxu3 %v3375_v18 }
 0x3fb   : > { %v3453_v19 = vpop.f32.mrf.mxu3 }
 0x3fc   : > { %v3454_v51 = vadd.f32 %v5279_v34, %v3453_v19 }
 0x3fe   : > { %3458 = vst [vmem:[%s521_s10] sm:$0xff] %v3454_v51 }
 0x403   : > { %v3455_v20 = vpop.f32.mrf.mxu3 }
 0x404   : > { %v3456_v21 = vadd.f32 %v5279_v34, %v3455_v20 }
 0x406   : > { %3459 = vst [vmem:[%s521_s10 + $0x8] sm:$0xff] %v3456_v21 }
 0x407   : > { %5519 = shalt.err (!%p5516_p7)
}
 0x408   : > { %s5644_s6 = smov 128   ;;  %s5645_s5 = smov 8  }
 0x409   : > { %5134 = dma.vmem_to_hbm [thread:$0]  (%p5831_p2), %s3476_s12, 256, %s3478_s7, %s3461_s27, %s5644_s6, %s5644_s6, %s5645_s5  }
 0x40a PF: > { %p5174_p11 = scmp.ge.s32.totalorder %s5630_s23, 2  ;;  %s3492_s8 = sand.u32 1, %s5602_s16  }
 0x40b   : > { %s3493_s10 = scalar_lea.sflag [#allocation6], %s3492_s8 }
 0x40c   : > { %p5160_p12 = pnand %p5174_p11, %p5837_p4 }
 0x40e   : > { %p5161_p13 = pneg %p5160_p12 }
 0x410   : > { %5585 = dma.done.wait (%p5161_p13), %s3493_s10, 256  }
 0x411   : > { %5587 = vsyncadd (%p5161_p13), %s3493_s10, 4294967040  ;;  %s31_s23 = sadd.s32 1, %s5630_s23   ;;  %s6131_s29 = sld [smem:[#allocation26_spill]] }
 0x412   : > { %p28_p9 = scmp.ge.s32.totalorder %s31_s23, 10   ;;  %s6132_s24 = sld [smem:[#allocation27_spill]] }
 0x413   : > { %s6133_s13 = smov %s5594_s14  ;;  %s6134_s14 = smov %s5598_s15 }
 0x414   : > { %s6135_s15 = smov %s5861_s2  ;;  %s6136_s16 = smov %s5606_s17 }
 0x415   : > { %s6137_s17 = smov %s5610_s18  ;;  %s6138_s18 = smov %s5845_s1 }
 0x416   : > { %s6139_s19 = smov %s5622_s21  ;;  %s6140_s20 = smov %s5626_s22 }
 0x417   : > { %s6141_s21 = smov %s6131_s29  ;;  %30 = sbr.rel (!%p28_p9) target bundleno = 24 (0x18), region = 140 }
 0x418   : > { %s6142_s22 = smov %s6132_s24 }
 0x41c   :  { %3499 = vsyncpa [#allocation5], 1 }
 0x41d   :  { %3501 = vsyncpa [#allocation5 + $0x1], 1 }
 0x41e   :  { %3502 = vsyncpa [#allocation8], 1 }
 0x41f   :  { %3504 = vsyncpa [#allocation8 + $0x1], 1 }
 0x420   :  { %3505 = vsyncpa [#allocation11], 1 }
 0x421   :  { %3506 = vsyncpa [#allocation14], 1 }
 0x422   :  { %3507 = vsyncpa [#allocation6], 1 }
 0x423   :  { %3509 = vsyncpa [#allocation6 + $0x1], 1 }

</bundles_post_ra>
